<compile_context>
chip_gen: v5e
topology: v5e:2x2
jax: 0.10.0
libtpu: 0.0.40
codegen_flags: <defaults>
</compile_context>

<pallas_src>
import functools

import jax
import jax.numpy as jnp
from jax.experimental import pallas as pl
from jax.experimental.pallas import tpu as pltpu


def _round_up(x, m):
    return ((x + m - 1) // m) * m


def _softplus(x):
    # numerically stable, single-branch softplus (one exp + one log1p on the EUP)
    return jnp.maximum(x, 0.0) + jnp.log1p(jnp.exp(-jnp.abs(x)))


def vae_kernel(x_ref, eps_ref,
               w_e1, b_e1, w_e2, b_e2, w_ml, b_ml, lv_mask,
               w_d1, b_d1, w_d2, b_d2, w_d3, b_d3,
               xout_ref, ml_ref, *, latent_dim, mxu_dtype, act_dtype):
    f32 = jnp.float32

    def dense(a, w_ref, b_ref):
        # bf16 (or f32) inputs to the MXU, f32 accumulation, f32 bias add
        return jnp.dot(a.astype(mxu_dtype), w_ref[...],
                       preferred_element_type=f32) + b_ref[...]

    def dense_relu(a, w_ref, b_ref):
        # bias add straight off the MXU accumulator (f32), then ReLU on the narrow
        # activation dtype so the next dot consumes it with no extra cast pass.
        return jnp.maximum(dense(a, w_ref, b_ref).astype(act_dtype), 0)

    x = x_ref[...]                                   # already in mxu_dtype from the wrapper

    # ---- encoder ----
    h = dense_relu(x, w_e1, b_e1)
    h = dense_relu(h, w_e2, b_e2)

    # ---- fused mean/logvar head (single MXU push, lane-dense 128-wide output slab) ----
    # lanes [0, L)      -> mean
    # lanes [L, 2L)     -> softplus(logvar pre-activation)
    # lanes [2L, 128)   -> zero padding (weights/bias/mask are zero there)
    raw = dense(h, w_ml, b_ml)                       # (tb, ML_PAD) f32
    sp = _softplus(raw)
    ml = raw + lv_mask[...] * (sp - raw)             # precomputed mask: 1 on logvar lanes
    ml_ref[...] = ml                                 # one unmasked wide f32 store

    mean = ml[:, :latent_dim]
    logvar = ml[:, latent_dim:2 * latent_dim]

    # ---- reparameterization: z = eps * exp(0.5*logvar) + mean ----
    z = eps_ref[...] * jnp.exp(0.5 * logvar) + mean

    # ---- decoder ----
    d = dense_relu(z, w_d1, b_d1)
    d = dense_relu(d, w_d2, b_d2)
    logits = dense(d, w_d3, b_d3)
    # sigmoid(x) == 0.5*tanh(0.5*x)+0.5 : stays on the EUP slot (no VPU divide)
    xout_ref[...] = (0.5 * jnp.tanh(0.5 * logits) + 0.5).astype(xout_ref.dtype)


def _pick_tb(batch):
    """Large batch tiles; even (>=2) step count for big batches so both v7x TCs are used."""
    if batch <= 512:
        return max(16, _round_up(batch, 16))         # whole batch in one grid step
    n_steps = 2 * max(1, -(-batch // 2048))          # even step count, tiles <= ~1024 rows
    return min(1024, _round_up(-(-batch // n_steps), 16))


def vae_forward(x_in, eps, kparams, *, tb=None, mxu_dtype=jnp.bfloat16, act_dtype=None):
    """Full VAE forward in one pallas_call, tiled over the batch.

    kparams: output of prepare_kernel_params (fused/padded mean-logvar head, bf16 weights).
    Returns (x_out, mean, logvar) just like the PyTorch module's forward (x_out cast back to f32).
    """
    if act_dtype is None:
        act_dtype = mxu_dtype
    input_dim = kparams["w_e1"].shape[0]
    hidden_dim = kparams["w_e2"].shape[0]
    latent_dim = kparams["w_d1"].shape[0]
    ml_pad = kparams["w_ml"].shape[1]                # fused head width, padded to a 128 multiple

    # .view(-1, input_dim); stream inputs at MXU precision (halves input HBM traffic)
    x = x_in.reshape(-1, input_dim).astype(mxu_dtype)
    B = x.shape[0]
    eps = eps.reshape(B, latent_dim).astype(mxu_dtype)

    if tb is None:
        tb = _pick_tb(B)
    else:
        tb = _round_up(int(tb), 16)                  # bf16 sublane packing: keep tb % 16 == 0
    Bp = pl.cdiv(B, tb) * tb
    if Bp != B:
        x = jnp.pad(x, ((0, Bp - B), (0, 0)))
        eps = jnp.pad(eps, ((0, Bp - B), (0, 0)))
    grid = (Bp // tb,)

    weight_names = ["w_e1", "b_e1", "w_e2", "b_e2", "w_ml", "b_ml", "lv_mask",
                    "w_d1", "b_d1", "w_d2", "b_d2", "w_d3", "b_d3"]
    weight_args = [kparams[n] for n in weight_names]

    def const_spec(arr):
        # Constant block index -> Pallas copies the weight to VMEM once and skips refetching.
        nd = arr.ndim
        return pl.BlockSpec(arr.shape, lambda i, _nd=nd: (0,) * _nd)

    in_specs = [pl.BlockSpec((tb, input_dim), lambda i: (i, 0)),
                pl.BlockSpec((tb, latent_dim), lambda i: (i, 0))]
    in_specs += [const_spec(w) for w in weight_args]

    out_dtype = mxu_dtype                            # bf16 writeback for the reconstruction
    out_shape = (jax.ShapeDtypeStruct((Bp, input_dim), out_dtype),
                 jax.ShapeDtypeStruct((Bp, ml_pad), jnp.float32))
    out_specs = (pl.BlockSpec((tb, input_dim), lambda i: (i, 0)),
                 pl.BlockSpec((tb, ml_pad), lambda i: (i, 0)))

    x_isz = jnp.dtype(mxu_dtype).itemsize
    weight_bytes = sum(int(w.size) * w.dtype.itemsize for w in weight_args)
    io_bytes = Bp * (input_dim * x_isz + latent_dim * x_isz + input_dim * x_isz + ml_pad * 4)
    flops = 2 * Bp * (input_dim * hidden_dim + hidden_dim * hidden_dim
                      + hidden_dim * ml_pad + latent_dim * hidden_dim
                      + hidden_dim * hidden_dim + hidden_dim * input_dim)
    transcendentals = Bp * (2 * ml_pad + latent_dim + input_dim)
    cost = pl.CostEstimate(flops=int(flops), transcendentals=int(transcendentals),
                           bytes_accessed=int(weight_bytes + io_bytes))

    # Explicit scoped-VMEM budget: double-buffered streaming tiles + 2x weights + generous
    # headroom for f32 temporaries; clamped so it stays legal on v7x's 64 MiB physical VMEM.
    io_tiles = 2 * tb * (input_dim * x_isz + latent_dim * x_isz + input_dim * x_isz + ml_pad * 4)
    act_tmp = 8 * tb * max(hidden_dim, input_dim, ml_pad) * 4
    vmem_limit = int(min(max(2 * (io_tiles + 2 * weight_bytes + act_tmp) + (4 << 20), 16 << 20),
                         48 << 20))

    kernel = functools.partial(vae_kernel, latent_dim=latent_dim,
                               mxu_dtype=mxu_dtype, act_dtype=act_dtype)

    x_out, ml = pl.pallas_call(
        kernel,
        grid=grid,
        in_specs=in_specs,
        out_specs=out_specs,
        out_shape=out_shape,
        compiler_params=pltpu.CompilerParams(dimension_semantics=("parallel",),
                                             vmem_limit_bytes=vmem_limit),
        cost_estimate=cost,
    )(x, eps, *weight_args)

    # Slice the lane-dense slab back into mean / logvar and drop the batch padding.
    x_out = x_out[:B].astype(jnp.float32)
    mean = ml[:B, :latent_dim]
    logvar = ml[:B, latent_dim:2 * latent_dim]
    return x_out, mean, logvar


# ----------------------------- parameter helpers -----------------------------

def init_linear(key, fan_in, fan_out):
    """PyTorch nn.Linear-style uniform init; weight returned as (in, out)."""
    kw, kb = jax.random.split(key)
    bound = 1.0 / float(fan_in) ** 0.5
    w = jax.random.uniform(kw, (fan_in, fan_out), minval=-bound, maxval=bound,
                           dtype=jnp.float32)
    b = jax.random.uniform(kb, (1, fan_out), minval=-bound, maxval=bound,
                           dtype=jnp.float32)
    return w, b


def make_params(key, input_dim, latent_dim, hidden_dim):
    keys = jax.random.split(key, 7)
    p = {}
    p["w_e1"], p["b_e1"] = init_linear(keys[0], input_dim, hidden_dim)
    p["w_e2"], p["b_e2"] = init_linear(keys[1], hidden_dim, hidden_dim)
    p["w_m"], p["b_m"] = init_linear(keys[2], hidden_dim, latent_dim)
    p["w_lv"], p["b_lv"] = init_linear(keys[3], hidden_dim, latent_dim)
    p["w_d1"], p["b_d1"] = init_linear(keys[4], latent_dim, hidden_dim)
    p["w_d2"], p["b_d2"] = init_linear(keys[5], hidden_dim, hidden_dim)
    p["w_d3"], p["b_d3"] = init_linear(keys[6], hidden_dim, input_dim)
    return p


def prepare_kernel_params(params, latent_dim, mxu_dtype=jnp.bfloat16):
    """Fuse the mean/logvar heads into one lane-padded weight, build the logvar-lane mask,
    and cast matmul weights for the MXU."""
    hidden_dim = params["w_m"].shape[0]
    ml_pad = max(128, ((2 * latent_dim + 127) // 128) * 128)
    w_ml = jnp.zeros((hidden_dim, ml_pad), jnp.float32)
    w_ml = w_ml.at[:, :latent_dim].set(params["w_m"])
    w_ml = w_ml.at[:, latent_dim:2 * latent_dim].set(params["w_lv"])
    b_ml = jnp.zeros((1, ml_pad), jnp.float32)
    b_ml = b_ml.at[:, :latent_dim].set(params["b_m"])
    b_ml = b_ml.at[:, latent_dim:2 * latent_dim].set(params["b_lv"])
    lv_mask = jnp.zeros((1, ml_pad), jnp.float32)
    lv_mask = lv_mask.at[:, latent_dim:2 * latent_dim].set(1.0)
    return {
        "w_e1": params["w_e1"].astype(mxu_dtype), "b_e1": params["b_e1"],
        "w_e2": params["w_e2"].astype(mxu_dtype), "b_e2": params["b_e2"],
        "w_ml": w_ml.astype(mxu_dtype), "b_ml": b_ml, "lv_mask": lv_mask,
        "w_d1": params["w_d1"].astype(mxu_dtype), "b_d1": params["b_d1"],
        "w_d2": params["w_d2"].astype(mxu_dtype), "b_d2": params["b_d2"],
        "w_d3": params["w_d3"].astype(mxu_dtype), "b_d3": params["b_d3"],
    }


# ----------------------------- pure-JAX reference -----------------------------

def vae_reference(x_in, eps, params, *, input_dim, mxu_dtype=None):
    """Pure-JAX reference matching the PyTorch forward semantics.

    If mxu_dtype is given, matmul inputs (and eps, which the kernel streams at MXU precision)
    are cast to that dtype, matching the kernel's bf16-at-MXU / f32-accumulation numerics;
    otherwise everything is f32.
    """
    f32 = jnp.float32

    def dense(a, w, b):
        if mxu_dtype is not None:
            a = a.astype(mxu_dtype)
            w = w.astype(mxu_dtype)
        return jnp.dot(a, w, preferred_element_type=f32) + b

    x = x_in.reshape(-1, input_dim).astype(f32)
    if mxu_dtype is not None:
        eps = eps.astype(mxu_dtype).astype(f32)
    h = jax.nn.relu(dense(x, params["w_e1"], params["b_e1"]))
    h = jax.nn.relu(dense(h, params["w_e2"], params["b_e2"]))
    mean = dense(h, params["w_m"], params["b_m"])
    logvar = jax.nn.softplus(dense(h, params["w_lv"], params["b_lv"]))
    z = eps * jnp.exp(0.5 * logvar) + mean
    d = jax.nn.relu(dense(z, params["w_d1"], params["b_d1"]))
    d = jax.nn.relu(dense(d, params["w_d2"], params["b_d2"]))
    x_out = jax.nn.sigmoid(dense(d, params["w_d3"], params["b_d3"]))
    return x_out, mean, logvar


if __name__ == "__main__":
    # small shapes consistent with the module's forward (x_in viewed as (-1, input_dim))
    INPUT_DIM, LATENT_DIM, HIDDEN_DIM = 128, 32, 256

    root = jax.random.PRNGKey(0)
    (k_params,) = jax.random.split(root, 1)

    params = make_params(k_params, INPUT_DIM, LATENT_DIM, HIDDEN_DIM)
    kparams = prepare_kernel_params(params, LATENT_DIM, mxu_dtype=jnp.bfloat16)

    def run_and_check(B, tb=None, check_f32=False):
        kx, ke = jax.random.split(jax.random.fold_in(root, B))
        x_in = jax.random.normal(kx, (B, INPUT_DIM), dtype=jnp.float32)
        # TODO(synk): torch.cuda.FloatTensor(...).normal_() is a non-deterministic in-op RNG;
        # we pass a deterministic eps ~ N(0,1) generated with jax.random instead.
        eps = jax.random.normal(ke, (B, LATENT_DIM), dtype=jnp.float32)

        out = vae_forward(x_in, eps, kparams, tb=tb)
        jax.block_until_ready(out)
        x_out, mean, logvar = out

        rx, rm, rlv = vae_reference(x_in, eps, params, input_dim=INPUT_DIM,
                                    mxu_dtype=jnp.bfloat16)
        # bf16-matched numerics (x_out gets extra slack: it is stored in bf16 by the kernel)
        assert jnp.allclose(mean, rm, atol=2e-3, rtol=2e-3)
        assert jnp.allclose(logvar, rlv, atol=2e-3, rtol=2e-3)
        assert jnp.allclose(x_out, rx, atol=8e-3)
        if check_f32:
            fx, fm, flv = vae_reference(x_in, eps, params, input_dim=INPUT_DIM, mxu_dtype=None)
            assert jnp.allclose(mean, fm, atol=5e-2, rtol=5e-2)
            assert jnp.allclose(logvar, flv, atol=5e-2, rtol=5e-2)
            assert jnp.allclose(x_out, fx, atol=5e-2, rtol=5e-2)

    run_and_check(16, check_f32=True)   # toy batch: whole batch in one grid step (grid=(1,))
    run_and_check(300)                  # padded batch path (Bp=304 != B), single 304-row tile
    run_and_check(1024)                 # default tb=512 -> 2-step grid (keeps both v7x TCs busy)
    run_and_check(1024, tb=256)         # explicit smaller tile, 4-step tiled path

    print("KERNEL_OK")
</pallas_src>

<mosaic_0001>
module attributes {stable_mosaic.version = 11 : i64} {
  func.func @vae_kernel(%arg0: i32, %arg1: memref<16x128xbf16, #tpu.memory_space<vmem>>, %arg2: memref<16x32xbf16, #tpu.memory_space<vmem>>, %arg3: memref<128x256xbf16, #tpu.memory_space<vmem>>, %arg4: memref<1x256xf32, #tpu.memory_space<vmem>>, %arg5: memref<256x256xbf16, #tpu.memory_space<vmem>>, %arg6: memref<1x256xf32, #tpu.memory_space<vmem>>, %arg7: memref<256x128xbf16, #tpu.memory_space<vmem>>, %arg8: memref<1x128xf32, #tpu.memory_space<vmem>>, %arg9: memref<1x128xf32, #tpu.memory_space<vmem>>, %arg10: memref<32x256xbf16, #tpu.memory_space<vmem>>, %arg11: memref<1x256xf32, #tpu.memory_space<vmem>>, %arg12: memref<256x256xbf16, #tpu.memory_space<vmem>>, %arg13: memref<1x256xf32, #tpu.memory_space<vmem>>, %arg14: memref<256x128xbf16, #tpu.memory_space<vmem>>, %arg15: memref<1x128xf32, #tpu.memory_space<vmem>>, %arg16: memref<16x128xbf16, #tpu.memory_space<vmem>>, %arg17: memref<16x128xf32, #tpu.memory_space<vmem>>) attributes {dimension_semantics = [#tpu.dimension_semantics<parallel>], iteration_bounds = array<i64: 1>, scalar_prefetch = 0 : i64, scratch_operands = 0 : i64, tpu.core_type = #tpu.core_type<tc>, window_params = [{transform_indices = @transform_0, window_bounds = array<i64: 16, 128>}, {transform_indices = @transform_1, window_bounds = array<i64: 16, 32>}, {pipeline_mode = #tpu.pipeline_mode<synchronous>, transform_indices = @transform_2, window_bounds = array<i64: 128, 256>}, {pipeline_mode = #tpu.pipeline_mode<synchronous>, transform_indices = @transform_3, window_bounds = array<i64: 1, 256>}, {pipeline_mode = #tpu.pipeline_mode<synchronous>, transform_indices = @transform_4, window_bounds = array<i64: 256, 256>}, {pipeline_mode = #tpu.pipeline_mode<synchronous>, transform_indices = @transform_5, window_bounds = array<i64: 1, 256>}, {pipeline_mode = #tpu.pipeline_mode<synchronous>, transform_indices = @transform_6, window_bounds = array<i64: 256, 128>}, {pipeline_mode = #tpu.pipeline_mode<synchronous>, transform_indices = @transform_7, window_bounds = array<i64: 1, 128>}, {pipeline_mode = #tpu.pipeline_mode<synchronous>, transform_indices = @transform_8, window_bounds = array<i64: 1, 128>}, {pipeline_mode = #tpu.pipeline_mode<synchronous>, transform_indices = @transform_9, window_bounds = array<i64: 32, 256>}, {pipeline_mode = #tpu.pipeline_mode<synchronous>, transform_indices = @transform_10, window_bounds = array<i64: 1, 256>}, {pipeline_mode = #tpu.pipeline_mode<synchronous>, transform_indices = @transform_11, window_bounds = array<i64: 256, 256>}, {pipeline_mode = #tpu.pipeline_mode<synchronous>, transform_indices = @transform_12, window_bounds = array<i64: 1, 256>}, {pipeline_mode = #tpu.pipeline_mode<synchronous>, transform_indices = @transform_13, window_bounds = array<i64: 256, 128>}, {pipeline_mode = #tpu.pipeline_mode<synchronous>, transform_indices = @transform_14, window_bounds = array<i64: 1, 128>}, {transform_indices = @transform_15, window_bounds = array<i64: 16, 128>}, {transform_indices = @transform_16, window_bounds = array<i64: 16, 128>}]} {
    %c0 = arith.constant 0 : index
    %c0_0 = arith.constant 0 : index
    %0 = vector.load %arg1[%c0, %c0_0] : memref<16x128xbf16, #tpu.memory_space<vmem>>, vector<16x128xbf16>
    %c0_1 = arith.constant 0 : index
    %c0_2 = arith.constant 0 : index
    %1 = vector.load %arg3[%c0_1, %c0_2] : memref<128x256xbf16, #tpu.memory_space<vmem>>, vector<128x256xbf16>
    %cst = arith.constant dense<0.000000e+00> : vector<16x256xf32>
    %2 = tpu.matmul %0, %1, %cst {dimension_numbers = #tpu.dot_dimension_numbers<[1], [0], [0], [1], [0, 0, 1, 1], [], []>} : vector<16x128xbf16>, vector<128x256xbf16>, vector<16x256xf32> -> vector<16x256xf32>
    %c0_3 = arith.constant 0 : index
    %c0_4 = arith.constant 0 : index
    %3 = vector.load %arg4[%c0_3, %c0_4] : memref<1x256xf32, #tpu.memory_space<vmem>>, vector<1x256xf32>
    %4 = vector.broadcast %3 : vector<1x256xf32> to vector<16x256xf32>
    %5 = arith.addf %2, %4 : vector<16x256xf32>
    %6 = arith.truncf %5 : vector<16x256xf32> to vector<16x256xbf16>
    %cst_5 = arith.constant 0.000000e+00 : bf16
    %7 = vector.broadcast %cst_5 : bf16 to vector<16x256xbf16>
    %8 = arith.maximumf %6, %7 : vector<16x256xbf16>
    %c0_6 = arith.constant 0 : index
    %c0_7 = arith.constant 0 : index
    %9 = vector.load %arg5[%c0_6, %c0_7] : memref<256x256xbf16, #tpu.memory_space<vmem>>, vector<256x256xbf16>
    %cst_8 = arith.constant dense<0.000000e+00> : vector<16x256xf32>
    %10 = tpu.matmul %8, %9, %cst_8 {dimension_numbers = #tpu.dot_dimension_numbers<[1], [0], [0], [1], [0, 0, 1, 1], [], []>} : vector<16x256xbf16>, vector<256x256xbf16>, vector<16x256xf32> -> vector<16x256xf32>
    %c0_9 = arith.constant 0 : index
    %c0_10 = arith.constant 0 : index
    %11 = vector.load %arg6[%c0_9, %c0_10] : memref<1x256xf32, #tpu.memory_space<vmem>>, vector<1x256xf32>
    %12 = vector.broadcast %11 : vector<1x256xf32> to vector<16x256xf32>
    %13 = arith.addf %10, %12 : vector<16x256xf32>
    %14 = arith.truncf %13 : vector<16x256xf32> to vector<16x256xbf16>
    %cst_11 = arith.constant 0.000000e+00 : bf16
    %15 = vector.broadcast %cst_11 : bf16 to vector<16x256xbf16>
    %16 = arith.maximumf %14, %15 : vector<16x256xbf16>
    %c0_12 = arith.constant 0 : index
    %c0_13 = arith.constant 0 : index
    %17 = vector.load %arg7[%c0_12, %c0_13] : memref<256x128xbf16, #tpu.memory_space<vmem>>, vector<256x128xbf16>
    %cst_14 = arith.constant dense<0.000000e+00> : vector<16x128xf32>
    %18 = tpu.matmul %16, %17, %cst_14 {dimension_numbers = #tpu.dot_dimension_numbers<[1], [0], [0], [1], [0, 0, 1, 1], [], []>} : vector<16x256xbf16>, vector<256x128xbf16>, vector<16x128xf32> -> vector<16x128xf32>
    %c0_15 = arith.constant 0 : index
    %c0_16 = arith.constant 0 : index
    %19 = vector.load %arg8[%c0_15, %c0_16] : memref<1x128xf32, #tpu.memory_space<vmem>>, vector<1x128xf32>
    %20 = vector.broadcast %19 : vector<1x128xf32> to vector<16x128xf32>
    %21 = arith.addf %18, %20 : vector<16x128xf32>
    %cst_17 = arith.constant 0.000000e+00 : f32
    %22 = vector.broadcast %cst_17 : f32 to vector<16x128xf32>
    %23 = arith.maximumf %21, %22 : vector<16x128xf32>
    %24 = math.absf %21 : vector<16x128xf32>
    %cst_18 = arith.constant 0.000000e+00 : f32
    %25 = vector.broadcast %cst_18 : f32 to vector<16x128xf32>
    %26 = arith.subf %25, %24 : vector<16x128xf32>
    %27 = math.exp %26 : vector<16x128xf32>
    %28 = math.log1p %27 : vector<16x128xf32>
    %29 = arith.addf %23, %28 : vector<16x128xf32>
    %c0_19 = arith.constant 0 : index
    %c0_20 = arith.constant 0 : index
    %30 = vector.load %arg9[%c0_19, %c0_20] : memref<1x128xf32, #tpu.memory_space<vmem>>, vector<1x128xf32>
    %31 = arith.subf %29, %21 : vector<16x128xf32>
    %32 = vector.broadcast %30 : vector<1x128xf32> to vector<16x128xf32>
    %33 = arith.mulf %32, %31 : vector<16x128xf32>
    %34 = arith.addf %21, %33 : vector<16x128xf32>
    %c0_21 = arith.constant 0 : index
    %c0_22 = arith.constant 0 : index
    %35 = vector.load %arg17[%c0_21, %c0_22] : memref<16x128xf32, #tpu.memory_space<vmem>>, vector<16x128xf32>
    tpu.vector_store %arg17[%c0_21, %c0_22], %34 {strides = array<i32>} : memref<16x128xf32, #tpu.memory_space<vmem>>, vector<16x128xf32>,
    %36 = vector.extract_strided_slice %34 {offsets = [0, 0], sizes = [16, 32], strides = [1, 1]} : vector<16x128xf32> to vector<16x32xf32>
    %37 = vector.extract_strided_slice %34 {offsets = [0, 32], sizes = [16, 32], strides = [1, 1]} : vector<16x128xf32> to vector<16x32xf32>
    %c0_23 = arith.constant 0 : index
    %c0_24 = arith.constant 0 : index
    %38 = vector.load %arg2[%c0_23, %c0_24] : memref<16x32xbf16, #tpu.memory_space<vmem>>, vector<16x32xbf16>
    %cst_25 = arith.constant 5.000000e-01 : f32
    %39 = vector.broadcast %cst_25 : f32 to vector<16x32xf32>
    %40 = arith.mulf %39, %37 : vector<16x32xf32>
    %41 = math.exp %40 : vector<16x32xf32>
    %42 = arith.extf %38 : vector<16x32xbf16> to vector<16x32xf32>
    %43 = arith.mulf %42, %41 : vector<16x32xf32>
    %44 = arith.addf %43, %36 : vector<16x32xf32>
    %45 = arith.truncf %44 : vector<16x32xf32> to vector<16x32xbf16>
    %c0_26 = arith.constant 0 : index
    %c0_27 = arith.constant 0 : index
    %46 = vector.load %arg10[%c0_26, %c0_27] : memref<32x256xbf16, #tpu.memory_space<vmem>>, vector<32x256xbf16>
    %cst_28 = arith.constant dense<0.000000e+00> : vector<16x256xf32>
    %47 = tpu.matmul %45, %46, %cst_28 {dimension_numbers = #tpu.dot_dimension_numbers<[1], [0], [0], [1], [0, 0, 1, 1], [], []>} : vector<16x32xbf16>, vector<32x256xbf16>, vector<16x256xf32> -> vector<16x256xf32>
    %c0_29 = arith.constant 0 : index
    %c0_30 = arith.constant 0 : index
    %48 = vector.load %arg11[%c0_29, %c0_30] : memref<1x256xf32, #tpu.memory_space<vmem>>, vector<1x256xf32>
    %49 = vector.broadcast %48 : vector<1x256xf32> to vector<16x256xf32>
    %50 = arith.addf %47, %49 : vector<16x256xf32>
    %51 = arith.truncf %50 : vector<16x256xf32> to vector<16x256xbf16>
    %cst_31 = arith.constant 0.000000e+00 : bf16
    %52 = vector.broadcast %cst_31 : bf16 to vector<16x256xbf16>
    %53 = arith.maximumf %51, %52 : vector<16x256xbf16>
    %c0_32 = arith.constant 0 : index
    %c0_33 = arith.constant 0 : index
    %54 = vector.load %arg12[%c0_32, %c0_33] : memref<256x256xbf16, #tpu.memory_space<vmem>>, vector<256x256xbf16>
    %cst_34 = arith.constant dense<0.000000e+00> : vector<16x256xf32>
    %55 = tpu.matmul %53, %54, %cst_34 {dimension_numbers = #tpu.dot_dimension_numbers<[1], [0], [0], [1], [0, 0, 1, 1], [], []>} : vector<16x256xbf16>, vector<256x256xbf16>, vector<16x256xf32> -> vector<16x256xf32>
    %c0_35 = arith.constant 0 : index
    %c0_36 = arith.constant 0 : index
    %56 = vector.load %arg13[%c0_35, %c0_36] : memref<1x256xf32, #tpu.memory_space<vmem>>, vector<1x256xf32>
    %57 = vector.broadcast %56 : vector<1x256xf32> to vector<16x256xf32>
    %58 = arith.addf %55, %57 : vector<16x256xf32>
    %59 = arith.truncf %58 : vector<16x256xf32> to vector<16x256xbf16>
    %cst_37 = arith.constant 0.000000e+00 : bf16
    %60 = vector.broadcast %cst_37 : bf16 to vector<16x256xbf16>
    %61 = arith.maximumf %59, %60 : vector<16x256xbf16>
    %c0_38 = arith.constant 0 : index
    %c0_39 = arith.constant 0 : index
    %62 = vector.load %arg14[%c0_38, %c0_39] : memref<256x128xbf16, #tpu.memory_space<vmem>>, vector<256x128xbf16>
    %cst_40 = arith.constant dense<0.000000e+00> : vector<16x128xf32>
    %63 = tpu.matmul %61, %62, %cst_40 {dimension_numbers = #tpu.dot_dimension_numbers<[1], [0], [0], [1], [0, 0, 1, 1], [], []>} : vector<16x256xbf16>, vector<256x128xbf16>, vector<16x128xf32> -> vector<16x128xf32>
    %c0_41 = arith.constant 0 : index
    %c0_42 = arith.constant 0 : index
    %64 = vector.load %arg15[%c0_41, %c0_42] : memref<1x128xf32, #tpu.memory_space<vmem>>, vector<1x128xf32>
    %65 = vector.broadcast %64 : vector<1x128xf32> to vector<16x128xf32>
    %66 = arith.addf %63, %65 : vector<16x128xf32>
    %cst_43 = arith.constant 5.000000e-01 : f32
    %67 = vector.broadcast %cst_43 : f32 to vector<16x128xf32>
    %68 = arith.mulf %67, %66 : vector<16x128xf32>
    %69 = math.tanh %68 : vector<16x128xf32>
    %cst_44 = arith.constant 5.000000e-01 : f32
    %70 = vector.broadcast %cst_44 : f32 to vector<16x128xf32>
    %71 = arith.mulf %70, %69 : vector<16x128xf32>
    %cst_45 = arith.constant 5.000000e-01 : f32
    %72 = vector.broadcast %cst_45 : f32 to vector<16x128xf32>
    %73 = arith.addf %71, %72 : vector<16x128xf32>
    %74 = arith.truncf %73 : vector<16x128xf32> to vector<16x128xbf16>
    %c0_46 = arith.constant 0 : index
    %c0_47 = arith.constant 0 : index
    %75 = vector.load %arg16[%c0_46, %c0_47] : memref<16x128xbf16, #tpu.memory_space<vmem>>, vector<16x128xbf16>
    tpu.vector_store %arg16[%c0_46, %c0_47], %74 {strides = array<i32>} : memref<16x128xbf16, #tpu.memory_space<vmem>>, vector<16x128xbf16>,
    return
  }
  func.func @transform_0(%arg0: i32) -> (i32, i32) {
    %c0_i32 = arith.constant 0 : i32
    %c0_i32_0 = arith.constant 0 : i32
    return %arg0, %c0_i32 : i32, i32
  }
  func.func @transform_1(%arg0: i32) -> (i32, i32) {
    %c0_i32 = arith.constant 0 : i32
    %c0_i32_0 = arith.constant 0 : i32
    return %arg0, %c0_i32 : i32, i32
  }
  func.func @transform_2(%arg0: i32) -> (i32, i32) {
    %c0_i32 = arith.constant 0 : i32
    %c0_i32_0 = arith.constant 0 : i32
    %c0_i32_1 = arith.constant 0 : i32
    return %c0_i32, %c0_i32_0 : i32, i32
  }
  func.func @transform_3(%arg0: i32) -> (i32, i32) {
    %c0_i32 = arith.constant 0 : i32
    %c0_i32_0 = arith.constant 0 : i32
    %c0_i32_1 = arith.constant 0 : i32
    return %c0_i32, %c0_i32_0 : i32, i32
  }
  func.func @transform_4(%arg0: i32) -> (i32, i32) {
    %c0_i32 = arith.constant 0 : i32
    %c0_i32_0 = arith.constant 0 : i32
    %c0_i32_1 = arith.constant 0 : i32
    return %c0_i32, %c0_i32_0 : i32, i32
  }
  func.func @transform_5(%arg0: i32) -> (i32, i32) {
    %c0_i32 = arith.constant 0 : i32
    %c0_i32_0 = arith.constant 0 : i32
    %c0_i32_1 = arith.constant 0 : i32
    return %c0_i32, %c0_i32_0 : i32, i32
  }
  func.func @transform_6(%arg0: i32) -> (i32, i32) {
    %c0_i32 = arith.constant 0 : i32
    %c0_i32_0 = arith.constant 0 : i32
    %c0_i32_1 = arith.constant 0 : i32
    return %c0_i32, %c0_i32_0 : i32, i32
  }
  func.func @transform_7(%arg0: i32) -> (i32, i32) {
    %c0_i32 = arith.constant 0 : i32
    %c0_i32_0 = arith.constant 0 : i32
    %c0_i32_1 = arith.constant 0 : i32
    return %c0_i32, %c0_i32_0 : i32, i32
  }
  func.func @transform_8(%arg0: i32) -> (i32, i32) {
    %c0_i32 = arith.constant 0 : i32
    %c0_i32_0 = arith.constant 0 : i32
    %c0_i32_1 = arith.constant 0 : i32
    return %c0_i32, %c0_i32_0 : i32, i32
  }
  func.func @transform_9(%arg0: i32) -> (i32, i32) {
    %c0_i32 = arith.constant 0 : i32
    %c0_i32_0 = arith.constant 0 : i32
    %c0_i32_1 = arith.constant 0 : i32
    return %c0_i32, %c0_i32_0 : i32, i32
  }
  func.func @transform_10(%arg0: i32) -> (i32, i32) {
    %c0_i32 = arith.constant 0 : i32
    %c0_i32_0 = arith.constant 0 : i32
    %c0_i32_1 = arith.constant 0 : i32
    return %c0_i32, %c0_i32_0 : i32, i32
  }
  func.func @transform_11(%arg0: i32) -> (i32, i32) {
    %c0_i32 = arith.constant 0 : i32
    %c0_i32_0 = arith.constant 0 : i32
    %c0_i32_1 = arith.constant 0 : i32
    return %c0_i32, %c0_i32_0 : i32, i32
  }
  func.func @transform_12(%arg0: i32) -> (i32, i32) {
    %c0_i32 = arith.constant 0 : i32
    %c0_i32_0 = arith.constant 0 : i32
    %c0_i32_1 = arith.constant 0 : i32
    return %c0_i32, %c0_i32_0 : i32, i32
  }
  func.func @transform_13(%arg0: i32) -> (i32, i32) {
    %c0_i32 = arith.constant 0 : i32
    %c0_i32_0 = arith.constant 0 : i32
    %c0_i32_1 = arith.constant 0 : i32
    return %c0_i32, %c0_i32_0 : i32, i32
  }
  func.func @transform_14(%arg0: i32) -> (i32, i32) {
    %c0_i32 = arith.constant 0 : i32
    %c0_i32_0 = arith.constant 0 : i32
    %c0_i32_1 = arith.constant 0 : i32
    return %c0_i32, %c0_i32_0 : i32, i32
  }
  func.func @transform_15(%arg0: i32) -> (i32, i32) {
    %c0_i32 = arith.constant 0 : i32
    %c0_i32_0 = arith.constant 0 : i32
    return %arg0, %c0_i32 : i32, i32
  }
  func.func @transform_16(%arg0: i32) -> (i32, i32) {
    %c0_i32 = arith.constant 0 : i32
    %c0_i32_0 = arith.constant 0 : i32
    return %arg0, %c0_i32 : i32, i32
  }
}

</mosaic_0001>

<bundles_post_ra>
// kernel: tpu_custom_call.1
= control target key start
LH: loop header
LB: loop body
LE: loop exit
PB: predicated region body
PF: predicated region fallthrough
CT: control target
= control target key end

     0   :  { %s2531_s0 = inlined_call_operand.hbm [shape: bf16[16,128], index: 0, kind: input, shape index: {}]   ;;  %s2532_s1 = inlined_call_operand.hbm [shape: bf16[16,32], index: 1, kind: input, shape index: {}]   ;;  %s2533_s2 = inlined_call_operand.hbm [shape: bf16[128,256], index: 2, kind: input, shape index: {}]   ;;  %s2534_s3 = inlined_call_operand.vmem [shape: f32[1,256], index: 3, kind: input, shape index: {}]   ;;  %s2535_s4 = inlined_call_operand.hbm [shape: bf16[256,256], index: 4, kind: input, shape index: {}]   ;;  %s2536_s5 = inlined_call_operand.vmem [shape: f32[1,256], index: 5, kind: input, shape index: {}]   ;;  %s2537_s6 = inlined_call_operand.hbm [shape: bf16[256,128], index: 6, kind: input, shape index: {}]   ;;  %s2538_s7 = inlined_call_operand.hbm [shape: f32[1,128], index: 7, kind: input, shape index: {}]   ;;  %s2539_s8 = inlined_call_operand.hbm [shape: f32[1,128], index: 8, kind: input, shape index: {}]   ;;  %s2540_s9 = inlined_call_operand.hbm [shape: bf16[32,256], index: 9, kind: input, shape index: {}]   ;;  %s2541_s10 = inlined_call_operand.vmem [shape: f32[1,256], index: 10, kind: input, shape index: {}]   ;;  %s2542_s11 = inlined_call_operand.hbm [shape: bf16[256,256], index: 11, kind: input, shape index: {}]   ;;  %s2543_s12 = inlined_call_operand.vmem [shape: f32[1,256], index: 12, kind: input, shape index: {}]   ;;  %s2544_s13 = inlined_call_operand.hbm [shape: bf16[256,128], index: 13, kind: input, shape index: {}]   ;;  %s2545_s14 = inlined_call_operand.vmem [shape: f32[1,128], index: 14, kind: input, shape index: {}]   ;;  %s2546_s15 = inlined_call_operand.hbm [shape: bf16[16,128], index: 15, kind: output, shape index: {0}]   ;;  %s2547_s16 = inlined_call_operand.hbm [shape: f32[16,128], index: 16, kind: output, shape index: {1}]  }
   0x1   :  { %2548 = sst [smem:[#allocation30_spill]] %s2531_s0 }
   0x2   :  { %22 = vsyncpa [#allocation3], 0 }
   0x3   :  { %23 = vsyncpa [#allocation6], 0 }
   0x4   :  { %24 = vsyncpa [#allocation9], 0 }
   0x5   :  { %25 = vsyncpa [#allocation12], 0 }
   0x6   :  { %26 = vsyncpa [#allocation15], 0 }
   0x7   :  { %27 = vsyncpa [#allocation18], 0 }
   0x8   :  { %28 = vsyncpa [#allocation4], 0 }
   0x9   :  { %29 = vsyncpa [#allocation21], 0  ;;  %s47_s23 = sshll.u32 %s2532_s1, 4  ;;  %s2338_s24 = smov [#allocation5]   ;;  %s48_s23 = int_to_ptr.hbm [resolvable:$true] %s47_s23 }
   0xa   :  { %s49_s25 = sshll.u32 %s2338_s24, 4  ;;  %s2339_s26 = smov 64   ;;  %s50_s25 = int_to_ptr.vmem [resolvable:$true] %s49_s25 }
   0xb   :  { %s2340_s27 = smov 4   ;;  %s75_s30 = sshll.u32 %s2535_s4, 4  ;;  %s76_s30 = int_to_ptr.hbm [resolvable:$true] %s75_s30 }
   0xc   :  { %55 = dma.hbm_to_vmem [thread:$0]  %s48_s23, 128, %s50_s25, [#allocation6], %s2339_s26, %s2339_s26, %s2340_s27  }
   0xd   :  { %s2341_s0 = smov [#allocation8]   ;;  %s104_s1 = sshll.u32 %s2538_s7, 4  ;;  %s105_s1 = int_to_ptr.hbm [resolvable:$true] %s104_s1 }
   0xe   :  { %s77_s17 = sshll.u32 %s2341_s0, 4  ;;  %s2342_s20 = smov 128   ;;  %s78_s17 = int_to_ptr.vmem [resolvable:$true] %s77_s17 }
   0xf   :  { %s2343_s21 = smov 8   ;;  %s125_s24 = sshll.u32 %s2540_s9, 4  ;;  %s126_s24 = int_to_ptr.hbm [resolvable:$true] %s125_s24 }
  0x10   :  { %83 = dma.hbm_to_vmem [thread:$0]  %s76_s30, 4096, %s78_s17, [#allocation9], %s2342_s20, %s2342_s20, %s2343_s21  }
  0x11   :  { %s2344_s4 = smov [#allocation11]   ;;  %s2345_s28 = smov [#allocation14]  }
  0x12   :  { %s106_s25 = sshll.u32 %s2344_s4, 4  ;;  %s127_s29 = sshll.u32 %s2345_s28, 4  ;;  %s107_s25 = int_to_ptr.vmem [resolvable:$true] %s106_s25  ;;  %s128_s29 = int_to_ptr.vmem [resolvable:$true] %s127_s29 }
  0x13   :  { %109 = dma.hbm_to_vmem [thread:$0]  %s105_s1, 16, %s107_s25, [#allocation12]  }
  0x14   :  { %s2549_s18 = sld [smem:[#allocation30_spill]]  ;;  %s60_s9 = sshll.u32 %s2533_s2, 4  ;;  %s61_s9 = int_to_ptr.hbm [resolvable:$true] %s60_s9 }
  0x15   :  { %133 = dma.hbm_to_vmem [thread:$0]  %s126_s24, 512, %s128_s29, [#allocation15], %s2342_s20, %s2342_s20, %s2343_s21  }
  0x16   :  { %s2346_s22 = smov [#allocation2]   ;;  %s2347_s1 = smov [#allocation7]  }
  0x17   :  { %s36_s23 = sshll.u32 %s2346_s22, 4  ;;  %s62_s4 = sshll.u32 %s2347_s1, 4  ;;  %s37_s23 = int_to_ptr.vmem [resolvable:$true] %s36_s23  ;;  %s63_s4 = int_to_ptr.vmem [resolvable:$true] %s62_s4 }
  0x18   :  { %s90_s7 = sshll.u32 %s2537_s6, 4  ;;  %s115_s29 = sshll.u32 %s2539_s8, 4  ;;  %s91_s7 = int_to_ptr.hbm [resolvable:$true] %s90_s7  ;;  %s116_s29 = int_to_ptr.hbm [resolvable:$true] %s115_s29 }
  0x19   :  { %68 = dma.hbm_to_vmem [thread:$0]  %s61_s9, 2048, %s63_s4, [#allocation6], %s2342_s20, %s2342_s20, %s2343_s21  }
  0x1a   :  { %s34_s19 = sshll.u32 %s2549_s18, 4  ;;  %s2348_s0 = smov [#allocation10]   ;;  %s35_s19 = int_to_ptr.hbm [resolvable:$true] %s34_s19 }
  0x1b   :  { %42 = dma.hbm_to_vmem [thread:$0]  %s35_s19, 128, %s37_s23, [#allocation3], %s2339_s26, %s2339_s26, %s2340_s27  }
  0x1c   :  { %s92_s18 = sshll.u32 %s2348_s0, 4  ;;  %s2349_s19 = smov [#allocation13]   ;;  %s93_s18 = int_to_ptr.vmem [resolvable:$true] %s92_s18 }
  0x1d   :  { %98 = dma.hbm_to_vmem [thread:$0]  %s91_s7, 2048, %s93_s18, [#allocation9], %s2339_s26, %s2339_s26, %s2340_s27  }
  0x1e   :  { %s117_s6 = sshll.u32 %s2349_s19, 4  ;;  %s140_s22 = sshll.u32 %s2542_s11, 4  ;;  %s118_s6 = int_to_ptr.vmem [resolvable:$true] %s117_s6  ;;  %s141_s22 = int_to_ptr.hbm [resolvable:$true] %s140_s22 }
  0x1f   :  { %120 = dma.hbm_to_vmem [thread:$0]  %s116_s29, 16, %s118_s6, [#allocation12]  }
  0x20   :  { %s155_s8 = sshll.u32 %s2544_s13, 4  ;;  %s2350_s1 = smov [#allocation16]   ;;  %s156_s8 = int_to_ptr.hbm [resolvable:$true] %s155_s8 }
  0x21   :  { %s142_s4 = sshll.u32 %s2350_s1, 4  ;;  %s2351_s25 = smov [#allocation17]   ;;  %s143_s4 = int_to_ptr.vmem [resolvable:$true] %s142_s4 }
  0x22   :  { %148 = dma.hbm_to_vmem [thread:$0]  %s141_s22, 4096, %s143_s4, [#allocation15], %s2342_s20, %s2342_s20, %s2343_s21  }
  0x23   :  { %s157_s28 = sshll.u32 %s2351_s25, 4  ;;  %s158_s28 = int_to_ptr.vmem [resolvable:$true] %s157_s28 }
  0x24   :  { %163 = dma.hbm_to_vmem [thread:$0]  %s156_s8, 2048, %s158_s28, [#allocation18], %s2339_s26, %s2339_s26, %s2340_s27  }
  0x25   :  { %2322 = dma.done.wait [#allocation3], 128  }
  0x26   :  { %2323 = vsyncadd [#allocation3], 4294967168 }
  0x27   :  { %2324 = dma.done.wait [#allocation6], 2176  }
  0x28   :  { %2325 = vsyncadd [#allocation6], 4294965120 }
  0x29   :  { %2326 = dma.done.wait [#allocation9], 6144  }
  0x2a   :  { %2327 = vsyncadd [#allocation9], 4294961152 }
  0x2b   :  { %2328 = dma.done.wait [#allocation12], 32  }
  0x2c   :  { %2329 = vsyncadd [#allocation12], 4294967264 }
  0x2d   :  { %2330 = dma.done.wait [#allocation15], 4608  }
  0x2e   :  { %2331 = vsyncadd [#allocation15], 4294962688 }
  0x2f   :  { %2332 = dma.done.wait [#allocation18], 2048  }
  0x30   :  { %2333 = vsyncadd [#allocation18], 4294965248  ;;  %v1464_v0 = vld [vmem:[#allocation7 + $0x70] sm:$0xf]  ;;  %v1888_v1 = vld [vmem:[#allocation7 + $0x74] sm:$0xf0] }
  0x31   :  { %v1887_v2 = vld [vmem:[#allocation7 + $0x74] sm:$0xf]  ;;  %v1465_v3 = vor.u32 %v1888_v1, %v1464_v0  ;;  %v1466_v4 = vld [vmem:[#allocation7 + $0x78] sm:$0xf0]  ;;  %v1456_v5 = vld [vmem:[#allocation7 + $0x60] sm:$0xf] }
  0x32   :  { %v1886_v6 = vld [vmem:[#allocation7 + $0x64] sm:$0xf0]  ;;  %v1469_v7 = vor.u32 %v1887_v2, %v1466_v4  ;;  %v1885_v8 = vld [vmem:[#allocation7 + $0x64] sm:$0xf]  ;;  %v1458_v9 = vld [vmem:[#allocation7 + $0x68] sm:$0xf0] }
  0x33   :  { %317 = vmatpush.bf16.msra.mxu0 %v1465_v3  ;;  %v1457_v10 = vor.u32 %v1886_v6, %v1456_v5  ;;  %v1461_v11 = vor.u32 %v1885_v8, %v1458_v9  ;;  %v1448_v12 = vld [vmem:[#allocation7 + $0x50] sm:$0xf]  ;;  %v1884_v13 = vld [vmem:[#allocation7 + $0x54] sm:$0xf0]  ;;  %v1883_v14 = vld [vmem:[#allocation7 + $0x54] sm:$0xf] }
  0x34   :  { %331 = vmatpush.bf16.msra.mxu1 %v1469_v7  ;;  %v1450_v15 = vld [vmem:[#allocation7 + $0x58] sm:$0xf0]  ;;  %v1449_v16 = vor.u32 %v1884_v13, %v1448_v12  ;;  %v1440_v18 = vld [vmem:[#allocation7 + $0x40] sm:$0xf]  ;;  %v1882_v19 = vld [vmem:[#allocation7 + $0x44] sm:$0xf0] }
  0x35   :  { %v1453_v17 = vor.u32 %v1883_v14, %v1450_v15  ;;  %v1881_v20 = vld [vmem:[#allocation7 + $0x44] sm:$0xf]  ;;  %v1442_v21 = vld [vmem:[#allocation7 + $0x48] sm:$0xf0]  ;;  %v1441_v22 = vor.u32 %v1882_v19, %v1440_v18  ;;  %v1528_v23 = vld [vmem:[#allocation8 + $0x70] sm:$0xf] }
  0x36   :  { %v1904_v24 = vld [vmem:[#allocation8 + $0x74] sm:$0xf0]  ;;  %v1592_v25 = vld [vmem:[#allocation8 + $0xf0] sm:$0xf]  ;;  %v1445_v26 = vor.u32 %v1881_v20, %v1442_v21  ;;  %v1879_v31 = vld [vmem:[#allocation7 + $0x34] sm:$0xf] }
  0x37   :  { %318 = vmatpush.bf16.msra.mxu0 %v1457_v10  ;;  %v1432_v27 = vld [vmem:[#allocation7 + $0x30] sm:$0xf]  ;;  %v1880_v28 = vld [vmem:[#allocation7 + $0x34] sm:$0xf0]  ;;  %v1529_v29 = vor.u32 %v1904_v24, %v1528_v23  ;;  %v1434_v32 = vld [vmem:[#allocation7 + $0x38] sm:$0xf0] }
  0x38   :  { %332 = vmatpush.bf16.msra.mxu1 %v1461_v11  ;;  %v1920_v30 = vld [vmem:[#allocation8 + $0xf4] sm:$0xf0]  ;;  %v1520_v34 = vld [vmem:[#allocation8 + $0x60] sm:$0xf]  ;;  %v1902_v35 = vld [vmem:[#allocation8 + $0x64] sm:$0xf0]  ;;  %v1433_v38 = vor.u32 %v1880_v28, %v1432_v27  ;;  %v1437_v43 = vor.u32 %v1879_v31, %v1434_v32 }
  0x39   :  { %v1593_v33 = vor.u32 %v1920_v30, %v1592_v25  ;;  %555 = vmatpush.bf16.msra.mxu2 %v1529_v29  ;;  %v1584_v36 = vld [vmem:[#allocation8 + $0xe0] sm:$0xf]  ;;  %v1918_v37 = vld [vmem:[#allocation8 + $0xe4] sm:$0xf0]  ;;  %v1521_v41 = vor.u32 %v1902_v35, %v1520_v34  ;;  %v1877_v44 = vld [vmem:[#allocation7 + $0x24] sm:$0xf] }
  0x3a   :  { %v1424_v39 = vld [vmem:[#allocation7 + $0x20] sm:$0xf]  ;;  %v1878_v40 = vld [vmem:[#allocation7 + $0x24] sm:$0xf0]  ;;  %v1585_v42 = vor.u32 %v1918_v37, %v1584_v36  ;;  %v1512_v45 = vld [vmem:[#allocation8 + $0x50] sm:$0xf] }
  0x3b   :  { %319 = vmatpush.bf16.msra.mxu0 %v1449_v16  ;;  %569 = vmatpush.bf16.msra.mxu3 %v1593_v33  ;;  %v1900_v46 = vld [vmem:[#allocation8 + $0x54] sm:$0xf0]  ;;  %v1426_v47 = vld [vmem:[#allocation7 + $0x28] sm:$0xf0]  ;;  %v1576_v48 = vld [vmem:[#allocation8 + $0xd0] sm:$0xf]  ;;  %v1425_v51 = vor.u32 %v1878_v40, %v1424_v39 }
  0x3c   :  { %333 = vmatpush.bf16.msra.mxu1 %v1453_v17  ;;  %v1916_v49 = vld [vmem:[#allocation8 + $0xd4] sm:$0xf0]  ;;  %v1513_v50 = vor.u32 %v1900_v46, %v1512_v45  ;;  %v1416_v52 = vld [vmem:[#allocation7 + $0x10] sm:$0xf]  ;;  %v1504_v54 = vld [vmem:[#allocation8 + $0x40] sm:$0xf]  ;;  %v1429_v56 = vor.u32 %v1877_v44, %v1426_v47 }
  0x3d   :  { %556 = vmatpush.bf16.msra.mxu2 %v1521_v41  ;;  %v1577_v53 = vor.u32 %v1916_v49, %v1576_v48  ;;  %v1898_v55 = vld [vmem:[#allocation8 + $0x44] sm:$0xf0]  ;;  %v1876_v57 = vld [vmem:[#allocation7 + $0x14] sm:$0xf0]  ;;  %v1568_v58 = vld [vmem:[#allocation8 + $0xc0] sm:$0xf] }
  0x3e   :  { %v1914_v59 = vld [vmem:[#allocation8 + $0xc4] sm:$0xf0]  ;;  %v1875_v60 = vld [vmem:[#allocation7 + $0x14] sm:$0xf]  ;;  %v1418_v61 = vld [vmem:[#allocation7 + $0x18] sm:$0xf0]  ;;  %v1505_v62 = vor.u32 %v1898_v55, %v1504_v54  ;;  %v1417_v63 = vor.u32 %v1876_v57, %v1416_v52 }
  0x3f   :  { %320 = vmatpush.bf16.msra.mxu0 %v1441_v22  ;;  %570 = vmatpush.bf16.msra.mxu3 %v1585_v42  ;;  %v1569_v0 = vor.u32 %v1914_v59, %v1568_v58  ;;  %v1421_v1 = vor.u32 %v1875_v60, %v1418_v61  ;;  %v1408_v2 = vld [vmem:[#allocation7] sm:$0xf]  ;;  %v1874_v3 = vld [vmem:[#allocation7 + $0x4] sm:$0xf0]  ;;  %v1873_v4 = vld [vmem:[#allocation7 + $0x4] sm:$0xf] }
  0x40   :  { %334 = vmatpush.bf16.msra.mxu1 %v1445_v26  ;;  %v1410_v5 = vld [vmem:[#allocation7 + $0x8] sm:$0xf0]  ;;  %v1903_v6 = vld [vmem:[#allocation8 + $0x74] sm:$0xf]  ;;  %v1530_v7 = vld [vmem:[#allocation8 + $0x78] sm:$0xf0]  ;;  %v1409_v10 = vor.u32 %v1874_v3, %v1408_v2 }
  0x41   :  { %557 = vmatpush.bf16.msra.mxu2 %v1513_v50  ;;  %v1919_v8 = vld [vmem:[#allocation8 + $0xf4] sm:$0xf]  ;;  %v1594_v9 = vld [vmem:[#allocation8 + $0xf8] sm:$0xf0]  ;;  %v1413_v11 = vor.u32 %v1873_v4, %v1410_v5  ;;  %v1533_v12 = vor.u32 %v1903_v6, %v1530_v7  ;;  %v1901_v14 = vld [vmem:[#allocation8 + $0x64] sm:$0xf] }
  0x42   :  { %v1597_v13 = vor.u32 %v1919_v8, %v1594_v9  ;;  %v1522_v15 = vld [vmem:[#allocation8 + $0x68] sm:$0xf0]  ;;  %v1872_v16 = vld [vmem:[#allocation2] sm:$0xff]  ;;  %v1917_v17 = vld [vmem:[#allocation8 + $0xe4] sm:$0xf]  ;;  %vm878_vm2 = vcmask 261120  }
  0x43   :  { %321 = vmatpush.bf16.msra.mxu0 %v1433_v38  ;;  %571 = vmatpush.bf16.msra.mxu3 %v1577_v53  ;;  %v1586_v18 = vld [vmem:[#allocation8 + $0xe8] sm:$0xf0]  ;;  %v1525_v19 = vor.u32 %v1901_v14, %v1522_v15  ;;  %v1899_v21 = vld [vmem:[#allocation8 + $0x54] sm:$0xf]  ;;  %v1514_v22 = vld [vmem:[#allocation8 + $0x58] sm:$0xf0] }
  0x44   :  { %335 = vmatpush.bf16.msra.mxu1 %v1437_v43  ;;  %v1589_v20 = vor.u32 %v1917_v17, %v1586_v18  ;;  %v1915_v23 = vld [vmem:[#allocation8 + $0xd4] sm:$0xf]  ;;  %v1578_v24 = vld [vmem:[#allocation8 + $0xd8] sm:$0xf0]  ;;  %v1517_v25 = vor.u32 %v1899_v21, %v1514_v22  ;;  %v1897_v27 = vld [vmem:[#allocation8 + $0x44] sm:$0xf] }
  0x45   :  { %558 = vmatpush.bf16.msra.mxu2 %v1505_v62  ;;  %v1581_v26 = vor.u32 %v1915_v23, %v1578_v24  ;;  %v1506_v28 = vld [vmem:[#allocation8 + $0x48] sm:$0xf0]  ;;  %v1913_v29 = vld [vmem:[#allocation8 + $0xc4] sm:$0xf]  ;;  %v1496_v33 = vld [vmem:[#allocation8 + $0x30] sm:$0xf] }
  0x46   :  { %v1570_v30 = vld [vmem:[#allocation8 + $0xc8] sm:$0xf0]  ;;  %v1509_v31 = vor.u32 %v1897_v27, %v1506_v28  ;;  %v1896_v34 = vld [vmem:[#allocation8 + $0x34] sm:$0xf0]  ;;  %v1560_v35 = vld [vmem:[#allocation8 + $0xb0] sm:$0xf] }
  0x47   :  { %322 = vmatpush.bf16.msra.mxu0 %v1425_v51  ;;  %572 = vmatpush.bf16.msra.mxu3 %v1569_v0  ;;  %v1573_v32 = vor.u32 %v1913_v29, %v1570_v30  ;;  %v1497_v36 = vor.u32 %v1896_v34, %v1496_v33  ;;  %v1912_v37 = vld [vmem:[#allocation8 + $0xb4] sm:$0xf0]  ;;  %v1895_v38 = vld [vmem:[#allocation8 + $0x34] sm:$0xf]  ;;  %v1498_v39 = vld [vmem:[#allocation8 + $0x38] sm:$0xf0] }
  0x48   :  { %336 = vmatpush.bf16.msra.mxu1 %v1429_v56  ;;  %v1561_v40 = vor.u32 %v1912_v37, %v1560_v35  ;;  %v1501_v41 = vor.u32 %v1895_v38, %v1498_v39  ;;  %v1911_v42 = vld [vmem:[#allocation8 + $0xb4] sm:$0xf]  ;;  %v1562_v43 = vld [vmem:[#allocation8 + $0xb8] sm:$0xf0]  ;;  %v1488_v45 = vld [vmem:[#allocation8 + $0x20] sm:$0xf] }
  0x49   :  { %559 = vmatpush.bf16.msra.mxu2 %v1497_v36  ;;  %v1565_v44 = vor.u32 %v1911_v42, %v1562_v43  ;;  %v1894_v46 = vld [vmem:[#allocation8 + $0x24] sm:$0xf0]  ;;  %v1552_v48 = vld [vmem:[#allocation8 + $0xa0] sm:$0xf]  ;;  %v1893_v50 = vld [vmem:[#allocation8 + $0x24] sm:$0xf] }
  0x4a   :  { %v1489_v47 = vor.u32 %v1894_v46, %v1488_v45  ;;  %v1910_v49 = vld [vmem:[#allocation8 + $0xa4] sm:$0xf0]  ;;  %v1490_v52 = vld [vmem:[#allocation8 + $0x28] sm:$0xf0]  ;;  %v1909_v53 = vld [vmem:[#allocation8 + $0xa4] sm:$0xf] }
  0x4b   :  { %323 = vmatpush.bf16.msra.mxu0 %v1417_v63  ;;  %573 = vmatpush.bf16.msra.mxu3 %v1561_v40  ;;  %v1553_v51 = vor.u32 %v1910_v49, %v1552_v48  ;;  %v1554_v54 = vld [vmem:[#allocation8 + $0xa8] sm:$0xf0]  ;;  %v1493_v55 = vor.u32 %v1893_v50, %v1490_v52  ;;  %v1480_v57 = vld [vmem:[#allocation8 + $0x10] sm:$0xf]  ;;  %v1892_v58 = vld [vmem:[#allocation8 + $0x14] sm:$0xf0] }
  0x4c   :  { %337 = vmatpush.bf16.msra.mxu1 %v1421_v1  ;;  %v1557_v56 = vor.u32 %v1909_v53, %v1554_v54  ;;  %v1544_v59 = vld [vmem:[#allocation8 + $0x90] sm:$0xf]  ;;  %v1481_v60 = vor.u32 %v1892_v58, %v1480_v57  ;;  %v1908_v61 = vld [vmem:[#allocation8 + $0x94] sm:$0xf0]  ;;  %v1891_v62 = vld [vmem:[#allocation8 + $0x14] sm:$0xf] }
  0x4d   :  { %560 = vmatpush.bf16.msra.mxu2 %v1489_v47  ;;  %v1482_v63 = vld [vmem:[#allocation8 + $0x18] sm:$0xf0]  ;;  %v1545_v0 = vor.u32 %v1908_v61, %v1544_v59  ;;  %v1907_v2 = vld [vmem:[#allocation8 + $0x94] sm:$0xf]  ;;  %v1472_v5 = vld [vmem:[#allocation8] sm:$0xf] }
  0x4e   :  { %v1485_v1 = vor.u32 %v1891_v62, %v1482_v63  ;;  %v1546_v3 = vld [vmem:[#allocation8 + $0x98] sm:$0xf0]  ;;  %v1890_v6 = vld [vmem:[#allocation8 + $0x4] sm:$0xf0]  ;;  %v1536_v7 = vld [vmem:[#allocation8 + $0x80] sm:$0xf] }
  0x4f   :  { %324 = vmatpush.bf16.msra.mxu0 %v1409_v10  ;;  %574 = vmatpush.bf16.msra.mxu3 %v1553_v51  ;;  %v1549_v4 = vor.u32 %v1907_v2, %v1546_v3  ;;  %v1473_v8 = vor.u32 %v1890_v6, %v1472_v5  ;;  %v1906_v9 = vld [vmem:[#allocation8 + $0x84] sm:$0xf0]  ;;  %v1889_v10 = vld [vmem:[#allocation8 + $0x4] sm:$0xf]  ;;  %v1538_v15 = vld [vmem:[#allocation8 + $0x88] sm:$0xf0] }
  0x50   :  { %338 = vmatpush.bf16.msra.mxu1 %v1413_v11  ;;  %v1474_v11 = vld [vmem:[#allocation8 + $0x8] sm:$0xf0]  ;;  %v1905_v14 = vld [vmem:[#allocation8 + $0x84] sm:$0xf]  ;;  %v1936_v17 = vld [vmem:[#allocation10 + $0x78] sm:$0xff]  ;;  %s1379_s6 = sshll.u32 %s2547_s16, 4  ;;  %s1380_s6 = int_to_ptr.hbm [resolvable:$true] %s1379_s6 }
  0x51   :  { %561 = vmatpush.bf16.msra.mxu2 %v1481_v60  ;;  %v1928_v18 = vld [vmem:[#allocation10 + $0x38] sm:$0xff]  ;;  %v1934_v21 = vld [vmem:[#allocation10 + $0x68] sm:$0xff]  ;;  %v1933_v22 = vld [vmem:[#allocation10 + $0x60] sm:$0xff]  ;;  %s2354_s16 = smov [#allocation19]   ;;  %s1366_s22 = sshll.u32 %s2546_s15, 4  ;;  %s1367_s22 = int_to_ptr.hbm [resolvable:$true] %s1366_s22 }
  0x52   :  { %325 = vmatmul.bf16.vlgmr.msra.gmra.mxu0 %v1872_v16  ;;  %v225_v23 = vld [vmem:[%s2534_s3] sm:$0x3]  ;;  %v1926_v40 = vld [vmem:[#allocation10 + $0x28] sm:$0xff]  ;;  %v1925_v42 = vld [vmem:[#allocation10 + $0x20] sm:$0xff] }
  0x53   :  { %583 = vmatpush.bf16.msrb.mxu0 %v1533_v12  ;;  %339 = vmatmul.bf16.vlgmr.msra.gmra.mxu1 %v1872_v16  ;;  %v1537_v12 = vor.u32 %v1906_v9, %v1536_v7  ;;  %v1541_v16 = vor.u32 %v1905_v14, %v1538_v15  ;;  %v228_v27 = vperm.slane %v225_v23, 1  ;;  %v1931_v43 = vld [vmem:[#allocation10 + $0x50] sm:$0xff]  ;;  %v1930_v45 = vld [vmem:[#allocation10 + $0x48] sm:$0xff]  ;;  %v1929_v47 = vld [vmem:[#allocation10 + $0x40] sm:$0xff] }
  0x54   :  { %597 = vmatpush.bf16.msrb.mxu1 %v1597_v13  ;;  %575 = vmatpush.bf16.msra.mxu3 %v1545_v0  ;;  %v1477_v13 = vor.u32 %v1889_v10, %v1474_v11  ;;  %v1923_v46 = vld [vmem:[#allocation10 + $0x10] sm:$0xff]  ;;  %v1922_v48 = vld [vmem:[#allocation10 + $0x8] sm:$0xff]  ;;  %v1921_v49 = vld [vmem:[#allocation10] sm:$0xff] }
  0x55   :  { %562 = vmatpush.bf16.msra.mxu2 %v1473_v8  ;;  %v389_v50 = vld [vmem:[%s2536_s5] sm:$0x3]  ;;  %v2015_v11 = vld [vmem:[#allocation11] ss:$0 sm:$0xff]  ;;  %s2352_s5 = smov 96  }
  0x56   :  { %v392_v52 = vperm.slane %v389_v50, 1 }
  0x57   :  { %584 = vmatpush.bf16.msrb.mxu0 %v1525_v19  ;;  %v1935_v19 = vld [vmem:[#allocation10 + $0x70] sm:$0xff] }
  0x58   :  { %598 = vmatpush.bf16.msrb.mxu1 %v1589_v20  ;;  %576 = vmatpush.bf16.msra.mxu3 %v1537_v12  ;;  %v1927_v20 = vld [vmem:[#allocation10 + $0x30] sm:$0xff] }
  0x59   :  { %755 = vmatpush.bf16.msrb.mxu2 %v1928_v18 }
  0x5b   :  { %585 = vmatpush.bf16.msrb.mxu0 %v1517_v25 }
  0x5c   :  { %599 = vmatpush.bf16.msrb.mxu1 %v1581_v26  ;;  %769 = vmatpush.bf16.msrb.mxu3 %v1936_v17  ;;  %v227_v26 = vperm.slane %v225_v23, 0 }
  0x5d   :  { %756 = vmatpush.bf16.msrb.mxu2 %v1927_v20 }
  0x5f   :  { %586 = vmatpush.bf16.msrb.mxu0 %v1509_v31 }
  0x60   :  { %600 = vmatpush.bf16.msrb.mxu1 %v1573_v32  ;;  %770 = vmatpush.bf16.msrb.mxu3 %v1935_v19 }
  0x61   :  { %757 = vmatpush.bf16.msrb.mxu2 %v1926_v40 }
  0x63   :  { %587 = vmatpush.bf16.msrb.mxu0 %v1501_v41  ;;  %v1932_v41 = vld [vmem:[#allocation10 + $0x58] sm:$0xff] }
  0x64   :  { %601 = vmatpush.bf16.msrb.mxu1 %v1565_v44  ;;  %771 = vmatpush.bf16.msrb.mxu3 %v1934_v21  ;;  %v1924_v44 = vld [vmem:[#allocation10 + $0x18] sm:$0xff] }
  0x65   :  { %758 = vmatpush.bf16.msrb.mxu2 %v1925_v42 }
  0x67   :  { %588 = vmatpush.bf16.msrb.mxu0 %v1493_v55 }
  0x68   :  { %602 = vmatpush.bf16.msrb.mxu1 %v1557_v56  ;;  %772 = vmatpush.bf16.msrb.mxu3 %v1933_v22  ;;  %v391_v56 = vperm.slane %v389_v50, 0 }
  0x69   :  { %759 = vmatpush.bf16.msrb.mxu2 %v1924_v44 }
  0x6b   :  { %589 = vmatpush.bf16.msrb.mxu0 %v1485_v1 }
  0x6c   :  { %603 = vmatpush.bf16.msrb.mxu1 %v1549_v4  ;;  %773 = vmatpush.bf16.msrb.mxu3 %v1932_v41 }
  0x6d   :  { %760 = vmatpush.bf16.msrb.mxu2 %v1923_v46 }
  0x6f   :  { %590 = vmatpush.bf16.msrb.mxu0 %v1477_v13 }
  0x70   :  { %604 = vmatpush.bf16.msrb.mxu1 %v1541_v16  ;;  %774 = vmatpush.bf16.msrb.mxu3 %v1931_v43  ;;  %v2016_v43 = vld [vmem:[#allocation13] ss:$0 sm:$0xff] }
  0x71   :  { %761 = vmatpush.bf16.msrb.mxu2 %v1922_v48 }
  0x74   :  { %775 = vmatpush.bf16.msrb.mxu3 %v1930_v45 }
  0x75   :  { %762 = vmatpush.bf16.msrb.mxu2 %v1921_v49 }
  0x78   :  { %776 = vmatpush.bf16.msrb.mxu3 %v1929_v47 }
  0xcf   :  { %v326_v24 = vpop.f32.mrf.mxu0 }
  0xd0   :  { %v340_v25 = vpop.f32.mrf.mxu1  ;;  %v327_v28 = vadd.f32 %v326_v24, %v227_v26 }
  0xd1   :  { %v341_v29 = vadd.f32 %v340_v25, %v228_v27 }
  0xd2   :  { %v351_v34 = vmax.f32 %v327_v28, 0.0 }
  0xd3   :  { %v352_v36 = vmax.f32 %v341_v29, 0.0 }
  0xd7   :  { %v328_v30 = vpop.f32.mrf.mxu0 }
  0xd8   :  { %v329_v31 = vadd.f32 %v328_v30, %v227_v26  ;;  %v342_v32 = vpop.f32.mrf.mxu1 }
  0xd9   :  { %v343_v33 = vadd.f32 %v342_v32, %v228_v27  ;;  %v1672_v32 = vld [vmem:[#allocation14 + $0x10] sm:$0xf] }
  0xda   :  { %v353_v35 = vmax.f32 %v329_v31, 0.0 }
  0xdb   :  { %v354_v37 = vmax.f32 %v343_v33, 0.0  ;;  %v1940_v33 = vld [vmem:[#allocation14 + $0x14] sm:$0xf0] }
  0xdc   :  { %v355_v38 = vpack.c.bf16 %v353_v35, %v351_v34 }
  0xdd   :  { %v356_v39 = vpack.c.bf16 %v354_v37, %v352_v36  ;;  %v1673_v36 = vor.u32 %v1940_v33, %v1672_v32  ;;  %v1722_v32 = vld [vmem:[#allocation16 + $0x50] sm:$0xf]  ;;  %v1952_v33 = vld [vmem:[#allocation16 + $0x54] sm:$0xf0] }
  0xde   :  { %563 = vmatmul.bf16.vlgmr.msra.gmra.mxu2 %v355_v38  ;;  %591 = vmatmul.bf16.vlgmr.msrb.gmra.mxu0 %v355_v38 }
  0xdf   :  { %577 = vmatmul.bf16.vlgmr.msra.gmra.mxu3 %v356_v39  ;;  %605 = vmatmul.bf16.vlgmr.msrb.gmra.mxu1 %v356_v39 }
  0xe0   :  { %888 = vmatpush.bf16.msra.mxu0 %v1673_v36  ;;  %v1968_v36 = vld [vmem:[#allocation16 + $0xd4] sm:$0xf0] }
 0x15b   :  { %v592_v51 = vpop.f32.mrf.mxu0 }
 0x15c   :  { %v606_v53 = vpop.f32.mrf.mxu1  ;;  %v593_v54 = vadd.f32 %v592_v51, %v392_v52 }
 0x15e   :  { %v607_v59 = vadd.f32 %v606_v53, %v593_v54 }
 0x160   :  { %v618_v0 = vmax.f32 %v607_v59, 0.0 }
 0x161   :  { %v564_v55 = vpop.f32.mrf.mxu2 }
 0x162   :  { %v578_v57 = vpop.f32.mrf.mxu3  ;;  %v565_v62 = vadd.f32 %v564_v55, %v391_v56 }
 0x163   :  { %v594_v58 = vpop.f32.mrf.mxu0 }
 0x164   :  { %v595_v60 = vadd.f32 %v594_v58, %v392_v52  ;;  %v608_v61 = vpop.f32.mrf.mxu1  ;;  %v579_v3 = vadd.f32 %v578_v57, %v565_v62 }
 0x166   :  { %v609_v63 = vadd.f32 %v608_v61, %v595_v60  ;;  %v617_v8 = vmax.f32 %v579_v3, 0.0 }
 0x168   :  { %v620_v1 = vmax.f32 %v609_v63, 0.0 }
 0x169   :  { %v566_v2 = vpop.f32.mrf.mxu2 }
 0x16a   :  { %v622_v4 = vpack.c.bf16 %v620_v1, %v618_v0  ;;  %v567_v5 = vadd.f32 %v566_v2, %v391_v56  ;;  %v580_v6 = vpop.f32.mrf.mxu3  ;;  %v1939_v0 = vld [vmem:[#allocation14 + $0x14] sm:$0xf]  ;;  %v1674_v1 = vld [vmem:[#allocation14 + $0x18] sm:$0xf0]  ;;  %v1664_v2 = vld [vmem:[#allocation14] sm:$0xf] }
 0x16b   :  { %v1677_v3 = vor.u32 %v1939_v0, %v1674_v1 }
 0x16c   :  { %v581_v7 = vadd.f32 %v580_v6, %v567_v5  ;;  %777 = vmatmul.bf16.vlgmr.msrb.gmra.mxu3 %v622_v4  ;;  %v1938_v4 = vld [vmem:[#allocation14 + $0x4] sm:$0xf0]  ;;  %v1937_v6 = vld [vmem:[#allocation14 + $0x4] sm:$0xf] }
 0x16d   :  { %v1665_v5 = vor.u32 %v1938_v4, %v1664_v2  ;;  %902 = vmatpush.bf16.msra.mxu1 %v1677_v3 }
 0x16e   :  { %v619_v9 = vmax.f32 %v581_v7, 0.0  ;;  %v1666_v7 = vld [vmem:[#allocation14 + $0x8] sm:$0xf0] }
 0x16f   :  { %889 = vmatpush.bf16.msra.mxu0 %v1665_v5  ;;  %v1706_v5 = vld [vmem:[#allocation16 + $0x30] sm:$0xf] }
 0x170   :  { %v621_v10 = vpack.c.bf16 %v619_v9, %v617_v8  ;;  %v1669_v8 = vor.u32 %v1937_v6, %v1666_v7  ;;  %v1738_v9 = vld [vmem:[#allocation16 + $0x70] sm:$0xf]  ;;  %v1948_v6 = vld [vmem:[#allocation16 + $0x34] sm:$0xf0] }
 0x171   :  { %v1770_v7 = vld [vmem:[#allocation16 + $0xb0] sm:$0xf] }
 0x172   :  { %763 = vmatmul.bf16.vlgmr.msrb.gmra.mxu2 %v621_v10  ;;  %903 = vmatpush.bf16.msra.mxu1 %v1669_v8  ;;  %v1956_v10 = vld [vmem:[#allocation16 + $0x74] sm:$0xf0]  ;;  %v1707_v8 = vor.u32 %v1948_v6, %v1706_v5 }
 0x1ef   :  { %v778_v12 = vpop.f32.mrf.mxu3 }
 0x1f5   :  { %v764_v13 = vpop.f32.mrf.mxu2 }
 0x1f6   :  { %v765_v14 = vadd.f32 %v2015_v11, %v764_v13  ;;  %v1972_v13 = vld [vmem:[#allocation16 + $0xf4] sm:$0xf0] }
 0x1f7   :  { %v780_v21 = vpop.f32.mrf.mxu3 }
 0x1f8   :  { %v779_v15 = vadd.f32 %v778_v12, %v765_v14  ;;  %v1739_v12 = vor.u32 %v1956_v10, %v1738_v9  ;;  %v1955_v14 = vld [vmem:[#allocation16 + $0x74] sm:$0xf]  ;;  %v1964_v9 = vld [vmem:[#allocation16 + $0xb4] sm:$0xf0] }
 0x1f9   :  { %v1947_v10 = vld [vmem:[#allocation16 + $0x34] sm:$0xf] }
 0x1fa   :  { %v785_v16 = vand.u32 2147483647, %v779_v15  ;;  %v783_v40 = vmax.f32 %v779_v15, 0.0  ;;  %1120 = vmatpush.bf16.msra.mxu2 %v1739_v12  ;;  %v1771_v12 = vor.u32 %v1964_v9, %v1770_v7 }
 0x1fc   :  { %v787_v17 = vsub.f32 0.0, %v785_v16 }
 0x1fd   :  { %v766_v18 = vpop.f32.mrf.mxu2 }
 0x1fe   :  { %v789_v19 = vmul.f32 1.442695, %v787_v17  ;;  %v767_v20 = vadd.f32 %v2015_v11, %v766_v18  ;;  %v1802_v11 = vld [vmem:[#allocation16 + $0xf0] sm:$0xf]  ;;  %v1971_v18 = vld [vmem:[#allocation16 + $0xf4] sm:$0xf] }
 0x1ff   :  { %v1803_v16 = vor.u32 %v1972_v13, %v1802_v11  ;;  %v1708_v11 = vld [vmem:[#allocation16 + $0x38] sm:$0xf0] }
 0x200   :  { %2018 = vpow2.f32 %v789_v19  ;;  %v781_v22 = vadd.f32 %v780_v21, %v767_v20  ;;  %v1804_v19 = vld [vmem:[#allocation16 + $0xf8] sm:$0xf0]  ;;  %v1730_v20 = vld [vmem:[#allocation16 + $0x60] sm:$0xf]  ;;  %v1711_v13 = vor.u32 %v1947_v10, %v1708_v11 }
 0x201   :  { %v1807_v21 = vor.u32 %v1971_v18, %v1804_v19  ;;  %1134 = vmatpush.bf16.msra.mxu3 %v1803_v16  ;;  %v1962_v19 = vld [vmem:[#allocation16 + $0xa4] sm:$0xf0] }
 0x202   :  { %v786_v23 = vand.u32 2147483647, %v781_v22  ;;  %v784_v52 = vmax.f32 %v781_v22, 0.0 }
 0x203   :  { %1162 = vmatpush.bf16.msrb.mxu1 %v1807_v21  ;;  %v1700_v21 = vld [vmem:[#allocation16 + $0x28] sm:$0xf0] }
 0x204   :  { %v788_v24 = vsub.f32 0.0, %v786_v23  ;;  %v1794_v23 = vld [vmem:[#allocation16 + $0xe0] sm:$0xf] }
 0x206   :  { %v2019_v25 = vpop.eup %2018  ;;  %v791_v26 = vmul.f32 1.442695, %v788_v24  ;;  %v1970_v24 = vld [vmem:[#allocation16 + $0xe4] sm:$0xf0] }
 0x207   :  { %v793_v27 = vadd.f32 1.0, %v2019_v25  ;;  %v796_v28 = vmul.f32 -0.5, %v2019_v25  ;;  %v799_v30 = vand.u32 2147483647, %v2019_v25 }
 0x208   :  { %2020 = vpow2.f32 %v791_v26  ;;  %v1795_v26 = vor.u32 %v1970_v24, %v1794_v23  ;;  %v1961_v24 = vld [vmem:[#allocation16 + $0xa4] sm:$0xf] }
 0x209   :  { %2022 = vlog2.f32 %v793_v27  ;;  %v797_v29 = vadd.f32 1.0, %v796_v28  ;;  %vm800_vm0 = vcmp.lt.f32.partialorder %v799_v30, 0.0004427343  ;;  %v1953_v27 = vld [vmem:[#allocation16 + $0x64] sm:$0xf] }
 0x20a   :  { %v1732_v28 = vld [vmem:[#allocation16 + $0x68] sm:$0xf0]  ;;  %1135 = vmatpush.bf16.msra.mxu3 %v1795_v26 }
 0x20b   :  { %v798_v38 = vmul.f32 %v2019_v25, %v797_v29  ;;  %v1969_v29 = vld [vmem:[#allocation16 + $0xe4] sm:$0xf]  ;;  %v1735_v30 = vor.u32 %v1953_v27, %v1732_v28  ;;  %v1690_v27 = vld [vmem:[#allocation16 + $0x10] sm:$0xf]  ;;  %v1944_v28 = vld [vmem:[#allocation16 + $0x14] sm:$0xf0] }
 0x20e   :  { %v2021_v31 = vpop.eup %2020 }
 0x20f   :  { %v2023_v34 = vpop.eup %2022  ;;  %v802_v35 = vadd.f32 1.0, %v2021_v31  ;;  %v805_v39 = vmul.f32 -0.5, %v2021_v31  ;;  %v808_v46 = vand.u32 2147483647, %v2021_v31 }
 0x210   :  { %v795_v37 = vmul.f32 0.6931472, %v2023_v34 }
 0x211   :  { %2024 = vlog2.f32 %v802_v35  ;;  %v806_v44 = vadd.f32 1.0, %v805_v39  ;;  %vm809_vm1 = vcmp.lt.f32.partialorder %v808_v46, 0.0004427343  ;;  %v1786_v35 = vld [vmem:[#allocation16 + $0xd0] sm:$0xf] }
 0x212   :  { %v801_v41 = vsel %vm800_vm0, %v798_v38, %v795_v37  ;;  %v1951_v37 = vld [vmem:[#allocation16 + $0x54] sm:$0xf]  ;;  %v1723_v38 = vor.u32 %v1952_v33, %v1722_v32  ;;  %v1724_v39 = vld [vmem:[#allocation16 + $0x58] sm:$0xf0]  ;;  %v1778_v46 = vld [vmem:[#allocation16 + $0xc0] sm:$0xf] }
 0x213   :  { %v811_v42 = vadd.f32 %v801_v41, %v783_v40  ;;  %v807_v50 = vmul.f32 %v2021_v31, %v806_v44  ;;  %v1796_v31 = vld [vmem:[#allocation16 + $0xe8] sm:$0xf0]  ;;  %v1967_v40 = vld [vmem:[#allocation16 + $0xd4] sm:$0xf]  ;;  %v1788_v41 = vld [vmem:[#allocation16 + $0xd8] sm:$0xf0] }
 0x214   :  { %v1799_v34 = vor.u32 %v1969_v29, %v1796_v31  ;;  %v1714_v44 = vld [vmem:[#allocation16 + $0x40] sm:$0xf]  ;;  %v1754_v29 = vld [vmem:[#allocation16 + $0x90] sm:$0xf]  ;;  %v1960_v31 = vld [vmem:[#allocation16 + $0x94] sm:$0xf0] }
 0x215   :  { %v814_v45 = vsub.f32 %v811_v42, %v779_v15  ;;  %v1787_v42 = vor.u32 %v1968_v36, %v1786_v35  ;;  %v1943_v32 = vld [vmem:[#allocation16 + $0x14] sm:$0xf]  ;;  %v1692_v33 = vld [vmem:[#allocation16 + $0x18] sm:$0xf0] }
 0x216   :  { %1163 = vmatpush.bf16.msrb.mxu1 %v1799_v34  ;;  %v1755_v34 = vor.u32 %v1960_v31, %v1754_v29  ;;  %v1695_v35 = vor.u32 %v1943_v32, %v1692_v33  ;;  %v1959_v36 = vld [vmem:[#allocation16 + $0x94] sm:$0xf] }
 0x217   :  { %v2025_v47 = vpop.eup %2024  ;;  %v819_v48 = vmul.f32 %v2016_v43, %v814_v45  ;;  %v1950_v45 = vld [vmem:[#allocation16 + $0x44] sm:$0xf0]  ;;  %1136 = vmatpush.bf16.msra.mxu3 %v1787_v42 }
 0x218   :  { %v804_v49 = vmul.f32 0.6931472, %v2025_v47  ;;  %v1791_v47 = vor.u32 %v1967_v40, %v1788_v41  ;;  %v1942_v40 = vld [vmem:[#allocation16 + $0x4] sm:$0xf0]  ;;  %v1746_v41 = vld [vmem:[#allocation16 + $0x80] sm:$0xf] }
 0x219   :  { %v2500_v51 = vadd.f32 %v819_v48, %v779_v15  ;;  %v1740_v15 = vld [vmem:[#allocation16 + $0x78] sm:$0xf0]  ;;  %v1966_v48 = vld [vmem:[#allocation16 + $0xc4] sm:$0xf0] }
 0x21a   :  { %v810_v53 = vsel %vm809_vm1, %v807_v50, %v804_v49  ;;  %v1743_v17 = vor.u32 %v1955_v14, %v1740_v15  ;;  %v1949_v49 = vld [vmem:[#allocation16 + $0x44] sm:$0xf]  ;;  %v1716_v50 = vld [vmem:[#allocation16 + $0x48] sm:$0xf0]  ;;  %1164 = vmatpush.bf16.msrb.mxu1 %v1791_v47  ;;  %v1963_v14 = vld [vmem:[#allocation16 + $0xb4] sm:$0xf] }
 0x21b   :  { %823 = vst [vmem:[#allocation20] sm:$0xff] %v2500_v51  ;;  %v812_v54 = vadd.f32 %v810_v53, %v784_v52  ;;  %v827_v55 = vmul.f32 0.5, %v2500_v51  ;;  %v1965_v52 = vld [vmem:[#allocation16 + $0xc4] sm:$0xf]  ;;  %v1780_v53 = vld [vmem:[#allocation16 + $0xc8] sm:$0xf0] }
 0x21c   :  { %1148 = vmatpush.bf16.msrb.mxu0 %v1743_v17  ;;  %v1772_v15 = vld [vmem:[#allocation16 + $0xb8] sm:$0xf0]  ;;  %v1762_v17 = vld [vmem:[#allocation16 + $0xa0] sm:$0xf] }
 0x21d   :  { %v815_v56 = vsub.f32 %v812_v54, %v781_v22  ;;  %v829_v57 = vmul.f32 1.442695, %v827_v55  ;;  %v1715_v54 = vor.u32 %v1950_v45, %v1714_v44  ;;  %v1779_v55 = vor.u32 %v1966_v48, %v1778_v46  ;;  %v1941_v44 = vld [vmem:[#allocation16 + $0x4] sm:$0xf]  ;;  %v1684_v45 = vld [vmem:[#allocation16 + $0x8] sm:$0xf0] }
 0x21e   :  { %v1775_v16 = vor.u32 %v1963_v14, %v1772_v15  ;;  %v1687_v47 = vor.u32 %v1941_v44, %v1684_v45  ;;  %v1957_v48 = vld [vmem:[#allocation16 + $0x84] sm:$0xf]  ;;  %v1983_v15 = vld [vmem:[#allocation17 + $0x50] sm:$0xff]  ;;  %v2017_v45 = vld [vmem:[%s2545_s14] ss:$0 sm:$0xff] }
 0x21f   :  { %v820_v58 = vmul.f32 %v2016_v43, %v815_v56  ;;  %2026 = vpow2.f32 %v829_v57  ;;  %v1727_v43 = vor.u32 %v1951_v37, %v1724_v39  ;;  %v1719_v56 = vor.u32 %v1949_v49, %v1716_v50  ;;  %1137 = vmatpush.bf16.msra.mxu3 %v1779_v55  ;;  %v1756_v37 = vld [vmem:[#allocation16 + $0x98] sm:$0xf0]  ;;  %v1682_v39 = vld [vmem:[#allocation16] sm:$0xf]  ;;  %v1748_v49 = vld [vmem:[#allocation16 + $0x88] sm:$0xf0] }
 0x220   :  { %1149 = vmatpush.bf16.msrb.mxu0 %v1735_v30  ;;  %v1783_v57 = vor.u32 %v1965_v52, %v1780_v53  ;;  %v1691_v30 = vor.u32 %v1944_v28, %v1690_v27  ;;  %v1683_v42 = vor.u32 %v1942_v40, %v1682_v39  ;;  %v1751_v50 = vor.u32 %v1957_v48, %v1748_v49  ;;  %v1988_v52 = vld [vmem:[#allocation17 + $0x78] sm:$0xff]  ;;  %v1979_v55 = vld [vmem:[#allocation17 + $0x30] sm:$0xff]  ;;  %v1977_v14 = vld [vmem:[#allocation17 + $0x20] sm:$0xff] }
 0x221   :  { %v2504_v59 = vadd.f32 %v820_v58, %v781_v22  ;;  %v1954_v22 = vld [vmem:[#allocation16 + $0x64] sm:$0xf0]  ;;  %v1990_v58 = vld [vmem:[#allocation5] sm:$0xff]  }
 0x222   :  { %v1731_v25 = vor.u32 %v1954_v22, %v1730_v20  ;;  %1165 = vmatpush.bf16.msrb.mxu1 %v1783_v57  ;;  %v1945_v20 = vld [vmem:[#allocation16 + $0x24] sm:$0xf]  ;;  %v1763_v22 = vor.u32 %v1962_v19, %v1762_v17  ;;  %v1980_v53 = vld [vmem:[#allocation17 + $0x38] sm:$0xff] }
 0x223   :  { %v828_v60 = vmul.f32 0.5, %v2504_v59  ;;  %824 = vst [vmem:[#allocation20 + $0x8] sm:$0xff] %v2504_v59  ;;  %1138 = vmatpush.bf16.msra.mxu3 %v1771_v12  ;;  %v1703_v23 = vor.u32 %v1945_v20, %v1700_v21  ;;  %v1985_v57 = vld [vmem:[#allocation17 + $0x60] sm:$0xff]  ;;  %v1978_v12 = vld [vmem:[#allocation17 + $0x28] sm:$0xff] }
 0x224   :  { %1121 = vmatpush.bf16.msra.mxu2 %v1731_v25  ;;  %1150 = vmatpush.bf16.msrb.mxu0 %v1727_v43  ;;  %v1764_v25 = vld [vmem:[#allocation16 + $0xa8] sm:$0xf0]  ;;  %v1958_v43 = vld [vmem:[#allocation16 + $0x84] sm:$0xf0]  ;;  %v1981_v17 = vld [vmem:[#allocation17 + $0x40] sm:$0xff] }
 0x225   :  { %v2027_v61 = vpop.eup %2026  ;;  %v831_v62 = vmul.f32 1.442695, %v828_v60  ;;  %v1767_v26 = vor.u32 %v1961_v24, %v1764_v25  ;;  %v1747_v46 = vor.u32 %v1958_v43, %v1746_v41  ;;  %v1973_v19 = vld [vmem:[#allocation17] sm:$0xff]  ;;  %v954_v20 = vld [vmem:[%s2543_s12] sm:$0x3]  ;;  %s2353_s12 = smov [#allocation20]  }
 0x226   :  { %837 = vrot.lane.b32.xlu0 %v2027_v61, %s2352_s5  ;;  %v1991_v61 = vunpack.c.l.bf16 %v1990_v58  ;;  %1166 = vmatpush.bf16.msrb.mxu1 %v1775_v16  ;;  %v1976_v16 = vld [vmem:[#allocation17 + $0x18] sm:$0xff]  ;;  %v956_v27 = vperm.slane %v954_v20, 0  ;;  %s1377_s0 = sshll.u32 %s2353_s12, 4  ;;  %s1378_s0 = int_to_ptr.vmem [resolvable:$true] %s1377_s0 }
 0x227   :  { %2028 = vpow2.f32 %v831_v62  ;;  %v1992_v62 = vunpack.c.h.bf16 %v1990_v58  ;;  %1139 = vmatpush.bf16.msra.mxu3 %v1763_v22  ;;  %v852_v58 = vld [vmem:[%s2541_s10] sm:$0x3] }
 0x228   :  { %1122 = vmatpush.bf16.msra.mxu2 %v1723_v38  ;;  %1151 = vmatpush.bf16.msrb.mxu0 %v1719_v56  ;;  %v1759_v38 = vor.u32 %v1959_v36, %v1756_v37  ;;  %v1986_v56 = vld [vmem:[#allocation17 + $0x68] sm:$0xff]  ;;  %1385 = dma.vmem_to_hbm [thread:$0]  %s1378_s0, 256, %s1380_s6, [#allocation21], %s2342_s20, %s2342_s20, %s2343_s21  }
 0x229   :  { %s1364_s20 = sshll.u32 %s2354_s16, 4  ;;  %s1365_s20 = int_to_ptr.vmem [resolvable:$true] %s1364_s20 }
 0x22a   :  { %1167 = vmatpush.bf16.msrb.mxu1 %v1767_v26 }
 0x22b   :  { %1140 = vmatpush.bf16.msra.mxu3 %v1755_v34 }
 0x22c   :  { %1123 = vmatpush.bf16.msra.mxu2 %v1715_v54  ;;  %1152 = vmatpush.bf16.msrb.mxu0 %v1711_v13  ;;  %v1987_v54 = vld [vmem:[#allocation17 + $0x70] sm:$0xff]  ;;  %v1984_v13 = vld [vmem:[#allocation17 + $0x58] sm:$0xff] }
 0x22d   :  { %v2029_v63 = vpop.eup %2028 }
 0x22e   :  { %839 = vrot.lane.b32.xlu0 %v2029_v63, %s2352_s5  ;;  %1168 = vmatpush.bf16.msrb.mxu1 %v1759_v38 }
 0x22f   :  { %1141 = vmatpush.bf16.msra.mxu3 %v1747_v46 }
 0x230   :  { %1124 = vmatpush.bf16.msra.mxu2 %v1707_v8  ;;  %1153 = vmatpush.bf16.msrb.mxu0 %v1703_v23  ;;  %v957_v23 = vperm.slane %v954_v20, 1 }
 0x232   :  { %1169 = vmatpush.bf16.msrb.mxu1 %v1751_v50 }
 0x233   :  { %1334 = vmatpush.bf16.msrb.mxu3 %v1988_v52 }
 0x234   :  { %1154 = vmatpush.bf16.msrb.mxu0 %v1695_v35 }
 0x237   :  { %1335 = vmatpush.bf16.msrb.mxu3 %v1987_v54 }
 0x238   :  { %1155 = vmatpush.bf16.msrb.mxu0 %v1687_v47 }
 0x23b   :  { %1336 = vmatpush.bf16.msrb.mxu3 %v1986_v56 }
 0x23f   :  { %1337 = vmatpush.bf16.msrb.mxu3 %v1985_v57 }
 0x243   :  { %1338 = vmatpush.bf16.msrb.mxu3 %v1984_v13 }
 0x247   :  { %1339 = vmatpush.bf16.msrb.mxu3 %v1983_v15 }
 0x298   :  { %v838_v60 = vpop.permute.xlu0 %837 }
 0x299   :  { %v843_v63 = vmul.f32 %v1991_v61, %v838_v60 }
 0x29b   :  { %v845_v2 = vadd.f32 %v843_v63, %v2500_v51  ;;  %v1698_v51 = vld [vmem:[#allocation16 + $0x20] sm:$0xf]  ;;  %v855_v63 = vperm.slane %v852_v58, 1 }
 0x2a0   :  { %v840_v0 = vpop.permute.xlu0 %839 }
 0x2a1   :  { %v844_v1 = vmul.f32 %v1992_v62, %v840_v0  ;;  %v854_v62 = vperm.slane %v852_v58, 0 }
 0x2a3   :  { %v846_v3 = vadd.f32 %v844_v1, %v2504_v59  ;;  %v1946_v59 = vld [vmem:[#allocation16 + $0x24] sm:$0xf0] }
 0x2a4   :  { %v1699_v18 = vor.u32 %v1946_v59, %v1698_v51  ;;  %v1982_v51 = vld [vmem:[#allocation17 + $0x48] sm:$0xff]  ;;  %v1975_v59 = vld [vmem:[#allocation17 + $0x10] sm:$0xff] }
 0x2a5   :  { %v847_v4 = vpack.c.bf16 %v846_v3, %v845_v2  ;;  %1340 = vmatpush.bf16.msrb.mxu3 %v1982_v51 }
 0x2a6   :  { %1125 = vmatpush.bf16.msra.mxu2 %v1699_v18  ;;  %v1974_v18 = vld [vmem:[#allocation17 + $0x8] sm:$0xff] }
 0x2a7   :  { %1678 = vmatmul.msk.bf16.vlgmr.msra.gmra.mxu0 %vm878_vm2, %v847_v4  ;;  %1679 = vmatmul.msk.bf16.vlgmr.msra.gmra.mxu1 %vm878_vm2, %v847_v4 }
 0x2a9   :  { %1341 = vmatpush.bf16.msrb.mxu3 %v1981_v17 }
 0x2aa   :  { %1126 = vmatpush.bf16.msra.mxu2 %v1691_v30 }
 0x2ae   :  { %1127 = vmatpush.bf16.msra.mxu2 %v1683_v42 }
 0x2b2   :  { %1320 = vmatpush.bf16.msrb.mxu2 %v1980_v53 }
 0x2b6   :  { %1321 = vmatpush.bf16.msrb.mxu2 %v1979_v55 }
 0x2ba   :  { %1322 = vmatpush.bf16.msrb.mxu2 %v1978_v12 }
 0x2be   :  { %1323 = vmatpush.bf16.msrb.mxu2 %v1977_v14 }
 0x2c2   :  { %1324 = vmatpush.bf16.msrb.mxu2 %v1976_v16 }
 0x2c6   :  { %1325 = vmatpush.bf16.msrb.mxu2 %v1975_v59 }
 0x2ca   :  { %1326 = vmatpush.bf16.msrb.mxu2 %v1974_v18 }
 0x2ce   :  { %1327 = vmatpush.bf16.msrb.mxu2 %v1973_v19 }
 0x324   :  { %v891_v60 = vpop.f32.mrf.mxu0  ;;  %v905_v61 = vpop.f32.mrf.mxu1 }
 0x325   :  { %v892_v0 = vadd.f32 %v891_v60, %v854_v62  ;;  %v906_v1 = vadd.f32 %v905_v61, %v855_v63 }
 0x327   :  { %v916_v6 = vmax.f32 %v892_v0, 0.0  ;;  %v917_v7 = vmax.f32 %v906_v1, 0.0 }
 0x32c   :  { %v893_v2 = vpop.f32.mrf.mxu0  ;;  %v907_v3 = vpop.f32.mrf.mxu1 }
 0x32d   :  { %v894_v4 = vadd.f32 %v893_v2, %v854_v62  ;;  %v908_v5 = vadd.f32 %v907_v3, %v855_v63 }
 0x32f   :  { %v918_v8 = vmax.f32 %v894_v4, 0.0  ;;  %v919_v9 = vmax.f32 %v908_v5, 0.0 }
 0x331   :  { %v920_v10 = vpack.c.bf16 %v918_v8, %v916_v6  ;;  %v921_v11 = vpack.c.bf16 %v919_v9, %v917_v7 }
 0x333   :  { %1128 = vmatmul.bf16.vlgmr.msra.gmra.mxu2 %v920_v10  ;;  %1142 = vmatmul.bf16.vlgmr.msra.gmra.mxu3 %v921_v11 }
 0x334   :  { %1156 = vmatmul.bf16.vlgmr.msrb.gmra.mxu0 %v920_v10  ;;  %1170 = vmatmul.bf16.vlgmr.msrb.gmra.mxu1 %v921_v11 }
 0x3b1   :  { %v1157_v21 = vpop.f32.mrf.mxu0  ;;  %v1171_v22 = vpop.f32.mrf.mxu1 }
 0x3b2   :  { %v1158_v24 = vadd.f32 %v1157_v21, %v957_v23 }
 0x3b4   :  { %v1172_v29 = vadd.f32 %v1171_v22, %v1158_v24 }
 0x3b6   :  { %v1129_v25 = vpop.f32.mrf.mxu2  ;;  %v1143_v26 = vpop.f32.mrf.mxu3  ;;  %v1183_v34 = vmax.f32 %v1172_v29, 0.0 }
 0x3b7   :  { %v1130_v31 = vadd.f32 %v1129_v25, %v956_v27 }
 0x3b9   :  { %v1159_v28 = vpop.f32.mrf.mxu0  ;;  %v1173_v32 = vpop.f32.mrf.mxu1  ;;  %v1144_v37 = vadd.f32 %v1143_v26, %v1130_v31 }
 0x3ba   :  { %v1160_v30 = vadd.f32 %v1159_v28, %v957_v23 }
 0x3bb   :  { %v1182_v42 = vmax.f32 %v1144_v37, 0.0 }
 0x3bc   :  { %v1174_v33 = vadd.f32 %v1173_v32, %v1160_v30 }
 0x3be   :  { %v1185_v35 = vmax.f32 %v1174_v33, 0.0  ;;  %v1131_v36 = vpop.f32.mrf.mxu2  ;;  %v1145_v40 = vpop.f32.mrf.mxu3 }
 0x3bf   :  { %v1132_v38 = vadd.f32 %v1131_v36, %v956_v27 }
 0x3c0   :  { %v1187_v39 = vpack.c.bf16 %v1185_v35, %v1183_v34 }
 0x3c1   :  { %v1146_v41 = vadd.f32 %v1145_v40, %v1132_v38 }
 0x3c2   :  { %1342 = vmatmul.bf16.vlgmr.msrb.gmra.mxu3 %v1187_v39 }
 0x3c3   :  { %v1184_v43 = vmax.f32 %v1146_v41, 0.0 }
 0x3c5   :  { %v1186_v44 = vpack.c.bf16 %v1184_v43, %v1182_v42 }
 0x3c7   :  { %1328 = vmatmul.bf16.vlgmr.msrb.gmra.mxu2 %v1186_v44 }
 0x445   :  { %v1343_v46 = vpop.f32.mrf.mxu3 }
 0x44a   :  { %v1329_v47 = vpop.f32.mrf.mxu2 }
 0x44b   :  { %v1330_v48 = vadd.f32 %v2017_v45, %v1329_v47 }
 0x44d   :  { %v1344_v49 = vadd.f32 %v1343_v46, %v1330_v48  ;;  %v1345_v54 = vpop.f32.mrf.mxu3 }
 0x44f   :  { %v1348_v50 = vmul.f32 0.5, %v1344_v49 }
 0x451   :  { %2030 = vtanh.f32 %v1348_v50 }
 0x452   :  { %v1331_v52 = vpop.f32.mrf.mxu2 }
 0x453   :  { %v1332_v53 = vadd.f32 %v2017_v45, %v1331_v52 }
 0x455   :  { %v1346_v55 = vadd.f32 %v1345_v54, %v1332_v53 }
 0x457   :  { %v1349_v56 = vmul.f32 0.5, %v1346_v55  ;;  %v2031_v57 = vpop.eup %2030 }
 0x458   :  { %v1352_v58 = vmul.f32 0.5, %v2031_v57 }
 0x459   :  { %2032 = vtanh.f32 %v1349_v56 }
 0x45a   :  { %v1354_v62 = vadd.f32 0.5, %v1352_v58 }
 0x45f   :  { %v2033_v60 = vpop.eup %2032 }
 0x460   :  { %v1353_v61 = vmul.f32 0.5, %v2033_v60 }
 0x462   :  { %v1355_v63 = vadd.f32 0.5, %v1353_v61 }
 0x464   :  { %v1996_v0 = vpack.c.bf16 %v1355_v63, %v1354_v62 }
 0x466   :  { %1997 = vst [vmem:[#allocation19] sm:$0xff] %v1996_v0  }
 0x467   :  { %1372 = dma.vmem_to_hbm [thread:$0]  %s1365_s20, 128, %s1367_s22, [#allocation4], %s2339_s26, %s2339_s26, %s2340_s27  }
 0x468   :  { %2334 = dma.done.wait [#allocation4], 128  }
 0x469   :  { %2335 = vsyncadd [#allocation4], 4294967168 }
 0x46a   :  { %2336 = dma.done.wait [#allocation21], 256  }
 0x46b   :  { %2337 = vsyncadd [#allocation21], 4294967040 }
 0x46c   :  { %1394 = vsyncpa [#allocation3], 1 }
 0x46d   :  { %1395 = vsyncpa [#allocation6], 1 }
 0x46e   :  { %1396 = vsyncpa [#allocation9], 1 }
 0x46f   :  { %1397 = vsyncpa [#allocation12], 1 }
 0x470   :  { %1398 = vsyncpa [#allocation15], 1 }
 0x471   :  { %1399 = vsyncpa [#allocation18], 1 }
 0x472   :  { %1400 = vsyncpa [#allocation4], 1 }
 0x473   :  { %1401 = vsyncpa [#allocation21], 1 }

</bundles_post_ra>
